<compile_context>
chip_gen: v7x
topology: tpu7x:2x2x1
jax: 0.10.0
libtpu: 0.0.40
codegen_flags: <defaults>
</compile_context>

<pallas_src>
import functools

import jax
import jax.numpy as jnp
from jax.experimental import pallas as pl
from jax.experimental.pallas import tpu as pltpu


def _conv1d_block_kernel(x_ref, w_ref, p_ref, o_ref, *,
                         c_in, c_out, k_size, bt, l_out, n_groups, eps,
                         compute_dtype):
    # x_ref: (1, C_in, bt, L_pad)   zero-padded input tile (bt batch elements)
    # w_ref: (C_out, K*C_in)        im2col conv weight
    # p_ref: (C_out, 3)             fused [bias | gamma | beta]
    # o_ref: (1, C_out, bt*L_out)   lane-dense output tile
    x = x_ref[0]                                            # (C_in, bt, L_pad)
    n = bt * l_out

    # ---- Conv1d as a single im2col matmul on the MXU ------------------------
    # a[k*C_in + c, b*L_out + l] = x[c, b, l + k]
    cols = [x[:, :, k:k + l_out].reshape(c_in, n) for k in range(k_size)]
    a = jnp.concatenate(cols, axis=0)                       # (K*C_in, N)

    y = jnp.dot(w_ref[...].astype(compute_dtype), a.astype(compute_dtype),
                preferred_element_type=jnp.float32)         # (C_out, N) f32

    p = p_ref[...].astype(jnp.float32)
    bias = p[:, 0:1]                                        # (C_out, 1)
    gamma = p[:, 1:2]
    beta = p[:, 2:3]

    y = y + bias                                            # (C_out, N)

    # ---- GroupNorm (biased variance, per (batch element, group)) ------------
    gs = c_out // n_groups
    y3 = y.reshape(c_out, bt, l_out)                        # (C_out, bt, L_out)

    ch_sum = jnp.sum(y3, axis=2)                            # (C_out, bt)  lane reduce
    ch_sumsq = jnp.sum(y3 * y3, axis=2)                     # (C_out, bt)

    # Reduce channels within a group (split the leading/sublane dim only).
    g_sum = jnp.sum(ch_sum.reshape(n_groups, gs, bt), axis=1)      # (G, bt)
    g_sumsq = jnp.sum(ch_sumsq.reshape(n_groups, gs, bt), axis=1)  # (G, bt)

    n_elem = float(gs * l_out)
    mean = g_sum / n_elem
    var = jnp.maximum(g_sumsq / n_elem - mean * mean, 0.0)  # clamp E[x^2]-E[x]^2
    inv = jax.lax.rsqrt(var + eps)                          # (G, bt)

    # Broadcast group stats back to channels.
    mean_c = jnp.broadcast_to(mean[:, None, :], (n_groups, gs, bt)).reshape(c_out, bt)
    inv_c = jnp.broadcast_to(inv[:, None, :], (n_groups, gs, bt)).reshape(c_out, bt)

    y_gn = (y3 - mean_c[:, :, None]) * inv_c[:, :, None]
    y_gn = y_gn * gamma[:, :, None] + beta[:, :, None]      # (C_out, bt, L_out)

    # ---- Mish: x * tanh(softplus(x)) ----------------------------------------
    # tanh(softplus(x)) == ((1+e^x)^2 - 1) / ((1+e^x)^2 + 1); guard large x
    # (softplus(x) ~= x, tanh -> 1), matching PyTorch's softplus threshold.
    t = jnp.exp(jnp.minimum(y_gn, 20.0))
    u = (1.0 + t) * (1.0 + t)
    mish = y_gn * (u - 1.0) / (u + 1.0)
    # TODO(synk): switch the divide to pl.reciprocal(u + 1.0, approx=True) when a
    # ~1e-3 output tolerance is acceptable (EUP approx reciprocal is near-free).
    out = jnp.where(y_gn > 20.0, y_gn, mish)

    o_ref[0] = out.reshape(c_out, n).astype(o_ref.dtype)


def conv1d_block(x, weight, bias, gamma, beta, *, padding, n_groups, eps=1e-5,
                 batch_tile=None, compute_dtype=jnp.float32):
    """x: (B, C_in, L); weight: (C_out, C_in, K); bias/gamma/beta: (C_out,).

    compute_dtype: matmul input dtype; keep f32 to match PyTorch numerics,
    jnp.bfloat16 is available on v6e/v7x when reduced precision is acceptable
    (accumulation stays f32 either way).
    """
    B, c_in, L = x.shape
    c_out, _, k_size = weight.shape
    assert c_out % n_groups == 0, (c_out, n_groups)
    l_out = L + 2 * padding - k_size + 1
    l_pad = L + 2 * padding

    if batch_tile is None:
        # Default: at most 2 grid blocks on the batch axis ("parallel") so both
        # v7x TensorCores get work, while each step processes ~B/2 batch elements
        # to amortize per-step pipeline overhead.  Use batch_tile=B on v5e/v6e
        # (single TC) for a single block.
        batch_tile = -(-B // 2) if B > 1 else 1
    nb = -(-B // batch_tile)
    b_pad = nb * batch_tile

    # ---- wrapper glue (fuses into one XLA copy): pad, fold batch into blocks ----
    x_p = jnp.pad(x, ((0, b_pad - B), (0, 0), (padding, padding)))      # (B_pad, C_in, L_pad)
    x_blk = jnp.transpose(x_p.reshape(nb, batch_tile, c_in, l_pad),
                          (0, 2, 1, 3))                                 # (nb, C_in, bt, L_pad)
    # TODO(synk): for large L, zero-pad inside the kernel (VMEM) instead of jnp.pad
    # to avoid the extra HBM round trip.

    # im2col weight: w2[o, k*C_in + c] = weight[o, c, k]
    w2 = jnp.transpose(weight, (0, 2, 1)).reshape(c_out, k_size * c_in)

    # Fuse bias/gamma/beta into one small parameter block.
    params = jnp.stack([bias, gamma, beta], axis=1)                     # (C_out, 3)

    # TODO(synk): Dropout(p=0.0) / eval-mode dropout is the identity, so it is omitted.

    kernel = functools.partial(
        _conv1d_block_kernel,
        c_in=c_in, c_out=c_out, k_size=k_size, bt=batch_tile, l_out=l_out,
        n_groups=n_groups, eps=float(eps), compute_dtype=compute_dtype)

    out = pl.pallas_call(
        kernel,
        out_shape=jax.ShapeDtypeStruct((nb, c_out, batch_tile * l_out), x.dtype),
        grid_spec=pltpu.PrefetchScalarGridSpec(
            num_scalar_prefetch=0,
            grid=(nb,),
            in_specs=[
                pl.BlockSpec((1, c_in, batch_tile, l_pad), lambda b: (b, 0, 0, 0)),
                pl.BlockSpec((c_out, k_size * c_in), lambda b: (0, 0)),
                pl.BlockSpec((c_out, 3), lambda b: (0, 0)),
            ],
            out_specs=pl.BlockSpec((1, c_out, batch_tile * l_out),
                                   lambda b: (b, 0, 0)),
        ),
        compiler_params=pltpu.CompilerParams(
            dimension_semantics=("parallel",)),
        # Tiles here are a few KiB; if batch_tile/L are scaled up, size them against
        # v7x's 64 MiB VMEM and set vmem_limit_bytes explicitly.
    )(x_blk, w2, params)

    # Un-fold batch from the lane dimension: (nb, C_out, bt*L_out) -> (B, C_out, L_out)
    out = out.reshape(nb, c_out, batch_tile, l_out)
    out = jnp.transpose(out, (0, 2, 1, 3)).reshape(b_pad, c_out, l_out)[:B]
    return out


def _reference(x, weight, bias, gamma, beta, *, padding, n_groups, eps=1e-5):
    # Plain-JAX reference mirroring PyTorch semantics (used only for checking).
    y = jax.lax.conv_general_dilated(
        x, weight, window_strides=(1,), padding=[(padding, padding)],
        dimension_numbers=("NCH", "OIH", "NCH")) + bias[None, :, None]
    B, C, L = y.shape
    yg = y.reshape(B, n_groups, C // n_groups * L)
    mean = yg.mean(axis=-1, keepdims=True)
    var = yg.var(axis=-1, keepdims=True)
    yn = ((yg - mean) / jnp.sqrt(var + eps)).reshape(B, C, L)
    yn = yn * gamma[None, :, None] + beta[None, :, None]
    return yn * jnp.tanh(jnp.logaddexp(0.0, yn))


if __name__ == "__main__":
    # Module config: Conv1dBlock(inp_channels=4, out_channels=16, kernel_size=3,
    #                            padding=1, n_groups=8, dropout=0.0)
    B, C_IN, C_OUT, L, K, PAD, NG = 2, 4, 16, 16, 3, 1, 8

    key = jax.random.PRNGKey(0)
    kx, kw, kb, kg, kbe = jax.random.split(key, 5)
    x = jax.random.normal(kx, (B, C_IN, L), dtype=jnp.float32)
    weight = jax.random.normal(kw, (C_OUT, C_IN, K), dtype=jnp.float32) * 0.2
    bias = jax.random.normal(kb, (C_OUT,), dtype=jnp.float32) * 0.1
    gamma = 1.0 + 0.1 * jax.random.normal(kg, (C_OUT,), dtype=jnp.float32)
    beta = 0.1 * jax.random.normal(kbe, (C_OUT,), dtype=jnp.float32)

    out = conv1d_block(x, weight, bias, gamma, beta, padding=PAD, n_groups=NG)
    out = jax.block_until_ready(out)

    ref = _reference(x, weight, bias, gamma, beta, padding=PAD, n_groups=NG)
    assert out.shape == (B, C_OUT, L), out.shape
    assert jnp.allclose(out, ref, atol=1e-4, rtol=1e-4), \
        f"max err {jnp.max(jnp.abs(out - ref))}"
    print("KERNEL_OK")
</pallas_src>

<mosaic_0001>
module attributes {stable_mosaic.version = 11 : i64} {
  func.func @_conv1d_block_kernel(%arg0: i32, %arg1: memref<1x4x1x18xf32, #tpu.memory_space<vmem>>, %arg2: memref<16x12xf32, #tpu.memory_space<vmem>>, %arg3: memref<16x3xf32, #tpu.memory_space<vmem>>, %arg4: memref<1x16x16xf32, #tpu.memory_space<vmem>>) attributes {dimension_semantics = [#tpu.dimension_semantics<parallel>], iteration_bounds = array<i64: 2>, scalar_prefetch = 0 : i64, scratch_operands = 0 : i64, tpu.core_type = #tpu.core_type<tc>, window_params = [{transform_indices = @transform_0, window_bounds = array<i64: 1, 4, 1, 18>}, {pipeline_mode = #tpu.pipeline_mode<synchronous>, transform_indices = @transform_1, window_bounds = array<i64: 16, 12>}, {pipeline_mode = #tpu.pipeline_mode<synchronous>, transform_indices = @transform_2, window_bounds = array<i64: 16, 3>}, {transform_indices = @transform_3, window_bounds = array<i64: 1, 16, 16>}]} {
    %c0 = arith.constant 0 : index
    %c0_0 = arith.constant 0 : index
    %c0_1 = arith.constant 0 : index
    %c0_2 = arith.constant 0 : index
    %0 = vector.load %arg1[%c0, %c0_0, %c0_1, %c0_2] : memref<1x4x1x18xf32, #tpu.memory_space<vmem>>, vector<1x4x1x18xf32>
    %1 = vector.shape_cast %0 : vector<1x4x1x18xf32> to vector<4x1x18xf32>
    %2 = vector.extract_strided_slice %1 {offsets = [0, 0, 0], sizes = [4, 1, 16], strides = [1, 1, 1]} : vector<4x1x18xf32> to vector<4x1x16xf32>
    %3 = vector.shape_cast %2 : vector<4x1x16xf32> to vector<4x16xf32>
    %4 = vector.extract_strided_slice %1 {offsets = [0, 0, 1], sizes = [4, 1, 16], strides = [1, 1, 1]} : vector<4x1x18xf32> to vector<4x1x16xf32>
    %5 = vector.shape_cast %4 : vector<4x1x16xf32> to vector<4x16xf32>
    %6 = vector.extract_strided_slice %1 {offsets = [0, 0, 2], sizes = [4, 1, 16], strides = [1, 1, 1]} : vector<4x1x18xf32> to vector<4x1x16xf32>
    %7 = vector.shape_cast %6 : vector<4x1x16xf32> to vector<4x16xf32>
    %8 = tpu.concatenate %3, %5, %7 in 0 : vector<4x16xf32>, vector<4x16xf32>, vector<4x16xf32> -> vector<12x16xf32>
    %c0_3 = arith.constant 0 : index
    %c0_4 = arith.constant 0 : index
    %9 = vector.load %arg2[%c0_3, %c0_4] : memref<16x12xf32, #tpu.memory_space<vmem>>, vector<16x12xf32>
    %cst = arith.constant dense<0.000000e+00> : vector<16x16xf32>
    %10 = tpu.matmul %9, %8, %cst {dimension_numbers = #tpu.dot_dimension_numbers<[1], [0], [0], [1], [0, 0, 1, 1], [], []>} : vector<16x12xf32>, vector<12x16xf32>, vector<16x16xf32> -> vector<16x16xf32>
    %c0_5 = arith.constant 0 : index
    %c0_6 = arith.constant 0 : index
    %11 = vector.load %arg3[%c0_5, %c0_6] : memref<16x3xf32, #tpu.memory_space<vmem>>, vector<16x3xf32>
    %12 = vector.extract_strided_slice %11 {offsets = [0, 0], sizes = [16, 1], strides = [1, 1]} : vector<16x3xf32> to vector<16x1xf32>
    %13 = vector.extract_strided_slice %11 {offsets = [0, 1], sizes = [16, 1], strides = [1, 1]} : vector<16x3xf32> to vector<16x1xf32>
    %14 = vector.extract_strided_slice %11 {offsets = [0, 2], sizes = [16, 1], strides = [1, 1]} : vector<16x3xf32> to vector<16x1xf32>
    %15 = vector.broadcast %12 : vector<16x1xf32> to vector<16x16xf32>
    %16 = arith.addf %10, %15 : vector<16x16xf32>
    %17 = vector.shape_cast %16 : vector<16x16xf32> to vector<16x1x16xf32>
    %cst_7 = arith.constant dense<0.000000e+00> : vector<16x1xf32>
    %18 = vector.multi_reduction <add>, %17, %cst_7 [2] : vector<16x1x16xf32> to vector<16x1xf32>
    %19 = arith.mulf %17, %17 : vector<16x1x16xf32>
    %cst_8 = arith.constant dense<0.000000e+00> : vector<16x1xf32>
    %20 = vector.multi_reduction <add>, %19, %cst_8 [2] : vector<16x1x16xf32> to vector<16x1xf32>
    %21 = vector.shape_cast %18 : vector<16x1xf32> to vector<8x2x1xf32>
    %cst_9 = arith.constant dense<0.000000e+00> : vector<8x1xf32>
    %22 = vector.multi_reduction <add>, %21, %cst_9 [1] : vector<8x2x1xf32> to vector<8x1xf32>
    %23 = vector.shape_cast %20 : vector<16x1xf32> to vector<8x2x1xf32>
    %cst_10 = arith.constant dense<0.000000e+00> : vector<8x1xf32>
    %24 = vector.multi_reduction <add>, %23, %cst_10 [1] : vector<8x2x1xf32> to vector<8x1xf32>
    %cst_11 = arith.constant 3.200000e+01 : f32
    %25 = vector.broadcast %cst_11 : f32 to vector<8x1xf32>
    %26 = arith.divf %22, %25 : vector<8x1xf32>
    %cst_12 = arith.constant 3.200000e+01 : f32
    %27 = vector.broadcast %cst_12 : f32 to vector<8x1xf32>
    %28 = arith.divf %24, %27 : vector<8x1xf32>
    %29 = arith.mulf %26, %26 : vector<8x1xf32>
    %30 = arith.subf %28, %29 : vector<8x1xf32>
    %cst_13 = arith.constant 0.000000e+00 : f32
    %31 = vector.broadcast %cst_13 : f32 to vector<8x1xf32>
    %32 = arith.maximumf %30, %31 : vector<8x1xf32>
    %cst_14 = arith.constant 9.99999974E-6 : f32
    %33 = vector.broadcast %cst_14 : f32 to vector<8x1xf32>
    %34 = arith.addf %32, %33 : vector<8x1xf32>
    %35 = math.rsqrt %34 : vector<8x1xf32>
    %36 = vector.shape_cast %26 : vector<8x1xf32> to vector<8x1x1xf32>
    %37 = vector.shape_cast %36 : vector<8x1x1xf32> to vector<8x1x1xf32>
    %38 = vector.broadcast %37 : vector<8x1x1xf32> to vector<8x2x1xf32>
    %39 = vector.shape_cast %38 : vector<8x2x1xf32> to vector<16x1xf32>
    %40 = vector.shape_cast %35 : vector<8x1xf32> to vector<8x1x1xf32>
    %41 = vector.shape_cast %40 : vector<8x1x1xf32> to vector<8x1x1xf32>
    %42 = vector.broadcast %41 : vector<8x1x1xf32> to vector<8x2x1xf32>
    %43 = vector.shape_cast %42 : vector<8x2x1xf32> to vector<16x1xf32>
    %44 = vector.shape_cast %39 : vector<16x1xf32> to vector<16x1x1xf32>
    %45 = vector.broadcast %44 : vector<16x1x1xf32> to vector<16x1x16xf32>
    %46 = arith.subf %17, %45 : vector<16x1x16xf32>
    %47 = vector.shape_cast %43 : vector<16x1xf32> to vector<16x1x1xf32>
    %48 = vector.broadcast %47 : vector<16x1x1xf32> to vector<16x1x16xf32>
    %49 = arith.mulf %46, %48 : vector<16x1x16xf32>
    %50 = vector.shape_cast %13 : vector<16x1xf32> to vector<16x1x1xf32>
    %51 = vector.broadcast %50 : vector<16x1x1xf32> to vector<16x1x16xf32>
    %52 = arith.mulf %49, %51 : vector<16x1x16xf32>
    %53 = vector.shape_cast %14 : vector<16x1xf32> to vector<16x1x1xf32>
    %54 = vector.broadcast %53 : vector<16x1x1xf32> to vector<16x1x16xf32>
    %55 = arith.addf %52, %54 : vector<16x1x16xf32>
    %cst_15 = arith.constant 2.000000e+01 : f32
    %56 = vector.broadcast %cst_15 : f32 to vector<16x1x16xf32>
    %57 = arith.minimumf %55, %56 : vector<16x1x16xf32>
    %58 = math.exp %57 : vector<16x1x16xf32>
    %cst_16 = arith.constant 1.000000e+00 : f32
    %59 = vector.broadcast %cst_16 : f32 to vector<16x1x16xf32>
    %60 = arith.addf %59, %58 : vector<16x1x16xf32>
    %cst_17 = arith.constant 1.000000e+00 : f32
    %61 = vector.broadcast %cst_17 : f32 to vector<16x1x16xf32>
    %62 = arith.addf %61, %58 : vector<16x1x16xf32>
    %63 = arith.mulf %60, %62 : vector<16x1x16xf32>
    %cst_18 = arith.constant 1.000000e+00 : f32
    %64 = vector.broadcast %cst_18 : f32 to vector<16x1x16xf32>
    %65 = arith.subf %63, %64 : vector<16x1x16xf32>
    %66 = arith.mulf %55, %65 : vector<16x1x16xf32>
    %cst_19 = arith.constant 1.000000e+00 : f32
    %67 = vector.broadcast %cst_19 : f32 to vector<16x1x16xf32>
    %68 = arith.addf %63, %67 : vector<16x1x16xf32>
    %69 = arith.divf %66, %68 : vector<16x1x16xf32>
    %cst_20 = arith.constant 2.000000e+01 : f32
    %70 = vector.broadcast %cst_20 : f32 to vector<16x1x16xf32>
    %71 = arith.cmpf ogt, %55, %70 : vector<16x1x16xf32>
    %72 = arith.select %71, %55, %69 : vector<16x1x16xi1>, vector<16x1x16xf32>
    %73 = vector.shape_cast %72 : vector<16x1x16xf32> to vector<16x16xf32>
    %c0_21 = arith.constant 0 : index
    %c0_22 = arith.constant 0 : index
    %c0_23 = arith.constant 0 : index
    %74 = vector.load %arg4[%c0_21, %c0_22, %c0_23] : memref<1x16x16xf32, #tpu.memory_space<vmem>>, vector<1x16x16xf32>
    %75 = vector.shape_cast %74 : vector<1x16x16xf32> to vector<16x16xf32>
    %76 = vector.shape_cast %73 : vector<16x16xf32> to vector<1x16x16xf32>
    tpu.vector_store %arg4[%c0_21, %c0_22, %c0_23], %76 {strides = array<i32>} : memref<1x16x16xf32, #tpu.memory_space<vmem>>, vector<1x16x16xf32>,
    return
  }
  func.func @transform_0(%arg0: i32) -> (i32, i32, i32, i32) {
    %c0_i32 = arith.constant 0 : i32
    %c0_i32_0 = arith.constant 0 : i32
    %c0_i32_1 = arith.constant 0 : i32
    %c0_i32_2 = arith.constant 0 : i32
    return %arg0, %c0_i32, %c0_i32_0, %c0_i32_1 : i32, i32, i32, i32
  }
  func.func @transform_1(%arg0: i32) -> (i32, i32) {
    %c0_i32 = arith.constant 0 : i32
    %c0_i32_0 = arith.constant 0 : i32
    %c0_i32_1 = arith.constant 0 : i32
    return %c0_i32, %c0_i32_0 : i32, i32
  }
  func.func @transform_2(%arg0: i32) -> (i32, i32) {
    %c0_i32 = arith.constant 0 : i32
    %c0_i32_0 = arith.constant 0 : i32
    %c0_i32_1 = arith.constant 0 : i32
    return %c0_i32, %c0_i32_0 : i32, i32
  }
  func.func @transform_3(%arg0: i32) -> (i32, i32, i32) {
    %c0_i32 = arith.constant 0 : i32
    %c0_i32_0 = arith.constant 0 : i32
    %c0_i32_1 = arith.constant 0 : i32
    return %arg0, %c0_i32, %c0_i32_0 : i32, i32, i32
  }
}

</mosaic_0001>

<bundles_post_ra>
// kernel: tpu_custom_call.1
= control target key start
LH: loop header
LB: loop body
LE: loop exit
PB: predicated region body
PF: predicated region fallthrough
CT: control target
= control target key end

     0   :  { %8 = vsyncpa [#allocation3], 0  ;;  %s2869_s0 = inlined_call_operand.hbm [shape: f32[2,4,1,18], index: 0, kind: input, shape index: {}]   ;;  %s2870_s1 = inlined_call_operand.vmem [shape: f32[16,12], index: 1, kind: input, shape index: {}]   ;;  %s2871_s2 = inlined_call_operand.vmem [shape: f32[16,3], index: 2, kind: input, shape index: {}]   ;;  %s2872_s3 = inlined_call_operand.hbm [shape: f32[2,16,16], index: 3, kind: output, shape index: {}]  }
   0x1   :  { %10 = vsyncpa [#allocation3 + $0x1], 0 }
   0x2   :  { %11 = vsyncpa [#allocation4], 0 }
   0x3   :  { %13 = vsyncpa [#allocation4 + $0x1], 0  ;;  %s2015_s12 = smov 0   ;;  %s2017_s13 = smov 0  }
   0x4   :  { %s2019_s14 = smov 0   ;;  %s2021_s15 = smov 0  }
   0x5 LB: > { %s2036_s16 = sadd.s32 4294967295, %s1980_s15   ;;  %s1688_s17 = sadd.s32 4294967294, %s1980_s15   ;;  %s1980_s15 = sphi %s2021_s15, %s2959_s15   ;;  %s1976_s14 = sphi %s2019_s14, %s2958_s14   ;;  %s1972_s13 = sphi %s2017_s13, %s2957_s13   ;;  %s1968_s12 = sphi %s2015_s12, %s2956_s12  }
   0x6   : > { %s2040_s18 = sadd.s32 1, %s1980_s15   ;;  %s26_s19 = sadd.s32 1, %s1976_s14 }
   0x7   : > { %s23_s20 = ssub.s32 %s1980_s15, %s2040_s18  ;;  %p33_p0 = scmp.ne.s32.totalorder %s1976_s14, %s1972_s13 }
   0x8   : > { %p24_p1 = scmp.eq.s32.totalorder %s23_s20, 0  ;;  %p34_p2 = scmp.eq.s32.totalorder %s1980_s15, 0 }
   0x9   : > { %p39_p3 = scmp.ne.s32.totalorder %s1972_s13, %s1968_s12  ;;  %p40_p4 = scmp.eq.s32.totalorder %s2036_s16, 0 }
   0xa   : > { %s2052_s21 = scalar_select %p24_p1, %s1976_s14, %s26_s19  }
   0xb   : > { %p2054_p5 = por %p34_p2, %p33_p0  ;;  %p2058_p6 = por %p40_p4, %p39_p3 }
   0xc   : > { %p105_p7 = scmp.eq.s32.totalorder %s2036_s16, 1  ;;  %p111_p8 = scmp.eq.s32.totalorder %s1688_s17, 1 }
   0xd   : > { %p1752_p10 = scmp.lt.s32.totalorder %s1980_s15, 2  ;;  %s137_s26 = sand.u32 1, %s1976_s14  }
   0xe   : > { %p2065_p11 = por %p105_p7, %p33_p0  ;;  %p2069_p12 = por %p111_p8, %p39_p3 }
   0xf   : > { %s1721_s27 = sshll.u32 %s1980_s15, 6  ;;  %s1691_s28 = sshll.u32 %s137_s26, 2 }
  0x10   : > { %s2892_s24 = scalar_select %p2065_p11, 1, 0 }
  0x11   : > { %s2893_s25 = scalar_select %p2069_p12, 1, 0 }
  0x12   : > { %s2078_s4 = scalar_lea.hbm %s2869_s0, %s1721_s27  ;;  %s141_s5 = scalar_lea.vmem [#allocation2], %s1691_s28 }
  0x13   : > { %s148_s6 = sshll.u32 %s141_s5, 4  ;;  %p2082_p13 = pnand %p1752_p10, %p2054_p5  ;;  %s2086_s6 = int_to_ptr.vmem [resolvable:$true] %s148_s6 }
  0x14   : > { %s2088_s8 = scalar_lea.sflag [#allocation3], %s137_s26  ;;  %s1884_s9 = scalar_lea.hbm %s2078_s4, 64 }
  0x15   : > { %p1885_p0 = scmp.ne.s32.totalorder %s2078_s4, %s1884_s9  ;;  %p1886_p1 = pneg %p2082_p13 }
  0x16   : > { %s1889_s17 = scalar_lea.hbm %s2869_s0, 128  ;;  %p1890_p4 = scmp.lt.u32.totalorder %s2078_s4, %s2869_s0 }
  0x17   : > { %p1887_p2 = pnand %p1886_p1, %p1885_p0  ;;  %p1891_p5 = scmp.lt.u32.totalorder %s1889_s17, %s1884_s9 }
  0x18   : > { %p1893_p8 = scmp.lt.u32.totalorder %s1884_s9, %s2078_s4 }
  0x19   : > { %p1888_p3 = pneg %p1887_p2  ;;  %p1892_p7 = por %p1891_p5, %p1890_p4 }
  0x1b   : > { %p1894_p10 = por %p1893_p8, %p1892_p7 }
  0x1d   : > { %p1895_p9 = pnand %p1894_p10, %p1888_p3 }
  0x1f   : > { %1898 = shalt.err (!%p1895_p9)
}
  0x20   : > { %s1899_s22 = scalar_lea.vmem %s2086_s6, 64  ;;  %s1982_s26 = smov [#allocation2]  }
  0x21   : > { %p1900_p0 = scmp.ne.s32.totalorder %s2086_s6, %s1899_s22  ;;  %s1904_s27 = sshll.u32 %s1982_s26, 4  ;;  %s1905_s27 = int_to_ptr.vmem [resolvable:$false] %s1904_s27 }
  0x22   : > { %s1906_s28 = scalar_lea.vmem %s1905_s27, 128  ;;  %p1907_p11 = scmp.lt.s32.totalorder %s2086_s6, %s1905_s27 }
  0x23   : > { %p1902_p2 = pnand %p1900_p0, %p1886_p1  ;;  %p1908_p4 = scmp.lt.s32.totalorder %s1906_s28, %s1899_s22 }
  0x25   : > { %p1903_p12 = pneg %p1902_p2  ;;  %p1909_p5 = por %p1908_p4, %p1907_p11 }
  0x27   : > { %p1910_p7 = pnand %p1909_p5, %p1903_p12 }
  0x29   : > { %1913 = shalt.err (!%p1910_p7)
}
  0x2a   : > { %s1983_s29 = smov 16   ;;  %s1984_s30 = smov 1  }
  0x2b   : > { %1747 = dma.hbm_to_vmem [thread:$0]  (!%p2082_p13), %s2078_s4, 64, %s2086_s6, %s2088_s8, %s1983_s29, %s1983_s29, %s1984_s30  }
  0x2c   : > { %p1694_p9 = scmp.ge.s32.totalorder %s1980_s15, 1  ;;  %p156_p1 = scmp.lt.s32.totalorder %s1980_s15, 3 }
  0x2e   : > { %p157_p3 = pnand %p1694_p9, %p156_p1 }
  0x30   : > { %160 = sbr.rel (%p157_p3) target bundleno = 757 (0x2f5), region = 32 }
  0x37   : > { %s2119_s5 = sand.u32 1, %s1972_s13  }
  0x38   : > { %s1695_s9 = sshll.u32 %s2119_s5, 2  ;;  %s163_s10 = scalar_lea.sflag [#allocation3], %s2119_s5 }
  0x39   : > { %s166_s11 = scalar_lea.vmem [#allocation2], %s1695_s9 }
  0x3a   : > { %1959 = dma.done.wait (%p2058_p6), %s163_s10, 64  }
  0x3b   : > { %1961 = vsyncadd (%p2058_p6), %s163_s10, 4294967232  ;;  %v202_v0 = vlaneseq  ;;  %v1985_v1 = vmov 1966171168   ;;  %v189_v6 = vld [vmem:[%s166_s11] sm:$0x1]  ;;  %vm244_vm0 = vcmask 97280  }
  0x3c   : > { %v200_v2 = vunpack.c.l.s4 %v1985_v1  ;;  %v190_v7 = vld [vmem:[%s166_s11 + $0x1] sm:$0x1]  ;;  %v191_v8 = vld [vmem:[%s166_s11 + $0x2] sm:$0x1]  ;;  %v192_v9 = vld [vmem:[%s166_s11 + $0x3] sm:$0x1] }
  0x3d   : > { %v2127_v3 = vshrl.u32 %v202_v0, 7  ;;  %v197_v10 = vcombine.low %v189_v6, %v190_v7  ;;  %v198_v11 = vcombine.low %v191_v8, %v192_v9  ;;  %v230_v15 = vld [vmem:[%s2870_s1] sm:$0xff]  ;;  %v1986_v19 = vmov 0   ;;  %s1988_s8 = smov 127   ;;  %v233_v22 = vld [vmem:[%s2871_s2 + $0x8] sm:$0xff]  ;;  %s1989_s20 = smov 126  }
  0x3e   : > { %v201_v4 = vunpack.c.0.s8 %v200_v2  ;;  %1731 = vmatprep.mubr.msk.f32.mxu0 %vm244_vm0, %v230_v15  ;;  %v232_v17 = vld [vmem:[%s2871_s2] sm:$0xff]  ;;  %1797 = vset.pattern.permute.xlu1 %v1986_v19  ;;  %v1987_v20 = vmov 1   ;;  %v953_v27 = vcombine.high %v233_v22, %v233_v22  ;;  %v1990_v41 = vmov 2   ;;  %v231_v53 = vld [vmem:[%s2870_s1 + $0x8] sm:$0xff]  ;;  %s1696_s27 = sshll.u32 %s2119_s5, 4  ;;  %s1722_s29 = sshll.u32 %s2036_s16, 8 }
  0x3f   : > { %236 = vperm.xlu1 %1797, %v232_v17   ;;  %1799 = vset.pattern.permute.xlu0 %v1987_v20  ;;  %v904_v29 = vcombine.high %v232_v17, %v232_v17  ;;  %vm228_vm1 = vcmask 1043456   ;;  %vm1991_vm2 = vmmov 1   ;;  %v2205_v57 = vsub.s32 0, %v2127_v3  ;;  %s188_s28 = scalar_lea.vmem [#allocation5], %s1696_s27  ;;  %s2822_s11 = scalar_lea.hbm %s2872_s3, %s1722_s29 }
  0x40   : > { %v2130_v5 = vsub.s32 %v201_v4, %v2127_v3  ;;  %vm1735_vm3 = vmpackc.low %vm228_vm1, %vm1991_vm2  ;;  %vm444_vm4 = vcmask 122880   ;;  %vm574_vm5 = vcmask 1041409   ;;  %vm598_vm6 = vcmask 1041408   ;;  %s1615_s30 = sshll.u32 %s188_s28, 4  ;;  %s1602_s23 = scalar_lea.sflag [#allocation4], %s2119_s5  ;;  %s2824_s30 = int_to_ptr.vmem [resolvable:$true] %s1615_s30 }
  0x41   : > { %s1914_s16 = scalar_lea.vmem %s2824_s30, 256  ;;  %p2953_p11 = scmp.ne.s32.totalorder %s2892_s24, 0 }
  0x42   : > { %2895 = vst [vmem:[#allocation8_spill] sm:$0xff] %v2130_v5  ;;  %v205_v12 = vrot.slane %v197_v10, %v2130_v5  ;;  %v212_v13 = vrot.slane %v198_v11, %v2130_v5  ;;  %v911_v21 = vrot.slane %v232_v17, %v2130_v5  ;;  %v960_v24 = vrot.slane %v233_v22, %v2130_v5  ;;  %p1915_p6 = scmp.ne.s32.totalorder %s2824_s30, %s1914_s16  ;;  %s1992_s4 = smov [#allocation5]  }
  0x43   : > { %241 = vperm.xlu1 %1797, %v233_v22   ;;  %v967_v32 = vrot.slane %v953_v27, %v2130_v5  ;;  %v918_v34 = vrot.slane %v904_v29, %v2130_v5  ;;  %s1918_s6 = sshll.u32 %s1992_s4, 4  ;;  %s1919_s6 = int_to_ptr.vmem [resolvable:$false] %s1918_s6 }
  0x44   : > { %v213_v14 = vcombine.low %v205_v12, %v212_v13  ;;  %v919_v23 = vcombine.high %v911_v21, %v911_v21  ;;  %v927_v25 = vrot.slane %v911_v21, %v2130_v5  ;;  %v2155_v28 = vrot.slane %v960_v24, %v2130_v5  ;;  %p1916_p12 = pnand %p1915_p6, %p2953_p11  ;;  %s1920_s7 = scalar_lea.vmem %s1919_s6, 512 }
  0x45   : > { %v2165_v35 = vrot.slane %v967_v32, %v2130_v5  ;;  %v934_v36 = vrot.slane %v918_v34, %v2130_v5  ;;  %v920_v37 = vcombine.high %v918_v34, %v918_v34  ;;  %v968_v43 = vcombine.high %v960_v24, %v960_v24  ;;  %p1921_p8 = scmp.lt.s32.totalorder %s2824_s30, %s1919_s6  ;;  %p1922_p10 = scmp.lt.s32.totalorder %s1920_s7, %s1914_s16 }
  0x46   : > { %v2139_v16 = vrot.slane %v213_v14, %v2130_v5  ;;  %v941_v26 = vrot.slane %v919_v23, %v2130_v5  ;;  %v949_v30 = vcombine.high %v927_v25, %v927_v25  ;;  %v2159_v31 = vcombine.high %v2155_v28, %v2155_v28  ;;  %p1917_p13 = pneg %p1916_p12 }
  0x47   : > { %1798 = vset.pattern.permute.xlu1 %v1987_v20  ;;  %v2171_v38 = vcombine.high %v2165_v35, %v2165_v35  ;;  %v948_v39 = vrot.slane %v920_v37, %v2130_v5  ;;  %v950_v40 = vcombine.high %v934_v36, %v934_v36  ;;  %v2180_v44 = vrot.slane %v968_v43, %v2130_v5  ;;  %p1923_p0 = por %p1922_p10, %p1921_p8 }
  0x48   : > { %v222_v18 = vcombine.low %v2139_v16, %v2139_v16  ;;  %1003 = vperm.xlu1 %1798, %v927_v25   ;;  %v951_v33 = vcombine.high %v941_v26, %v941_v26  ;;  %v969_v46 = vcombine.high %v967_v32, %v967_v32 }
  0x49   : > { %v2175_v42 = vcombine.high %v948_v39, %v948_v39  ;;  %v2185_v45 = vcombine.high %v2180_v44, %v2180_v44  ;;  %p1924_p2 = pnand %p1923_p0, %p1917_p13 }
  0x4a   : > { %223 = vrot.lane.b32.xlu0 %v222_v18, %s1988_s8  ;;  %v2189_v47 = vrot.slane %v969_v46, %v2130_v5 }
  0x4c   : > { %1019 = vperm.xlu1 %1798, %v949_v30   ;;  %v2194_v48 = vcombine.high %v2189_v47, %v2189_v47 }
  0x4e   : > { %226 = vrot.lane.b32.xlu0 %v2139_v16, %s1989_s20 }
  0x50   : > { %1027 = vperm.xlu1 %1798, %v951_v33  }
  0x52   : > { %1011 = vperm.xlu0 %1799, %v941_v26  }
  0x54   : > { %1035 = vperm.xlu1 %1798, %v934_v36  }
  0x56   : > { %1083 = vperm.xlu0 %1799, %v2159_v31  }
  0x58   : > { %1043 = vperm.xlu1 %1798, %v948_v39  }
  0x5a   : > { %1099 = vperm.xlu0 %1799, %v2165_v35  }
  0x5c   : > { %1051 = vperm.xlu1 %1798, %v950_v40  }
  0x5e   : > { %1115 = vperm.xlu0 %1799, %v2171_v38  }
  0x60   : > { %1059 = vperm.xlu1 %1798, %v2175_v42  }
  0x62   : > { %1800 = vset.pattern.permute.xlu0 %v1990_v41 }
  0x63   : > { %1147 = vperm.xlu0 %1800, %v927_v25  }
  0x64   : > { %1067 = vperm.xlu1 %1798, %v2155_v28  }
  0x67   : > { %1171 = vperm.xlu0 %1800, %v951_v33  }
  0x68   : > { %1075 = vperm.xlu1 %1798, %v2180_v44  }
  0x6b   : > { %1187 = vperm.xlu0 %1800, %v948_v39  }
  0x6c   : > { %1091 = vperm.xlu1 %1798, %v2185_v45  }
  0x70   : > { %1107 = vperm.xlu1 %1798, %v2189_v47  }
  0x74   : > { %1123 = vperm.xlu1 %1798, %v2194_v48  }
  0x78   : > { %1801 = vset.pattern.permute.xlu1 %v1990_v41 }
  0x79   : > { %1155 = vperm.xlu1 %1801, %v941_v26  }
  0x7d   : > { %1163 = vperm.xlu1 %1801, %v949_v30  }
  0x81   : > { %1179 = vperm.xlu1 %1801, %v934_v36  }
  0x85   : > { %1195 = vperm.xlu1 %1801, %v950_v40  }
  0xbc   : > { %v224_v49 = vpop.permute.xlu0 %223 }
  0xbd   : > { %v229_v50 = vsel %vm228_vm1, %v2139_v16, %v224_v49 }
  0xbe   : > { %v237_v54 = vpop.permute.xlu1 %236 }
  0xc0   : > { %v227_v51 = vpop.permute.xlu0 %226 }
  0xc1   : > { %v1734_v52 = vpack.c.bf16 %v227_v51, %v229_v50 }
  0xc2   : > { %v242_v55 = vpop.permute.xlu1 %241 }
  0xc3   : > { %1736 = vmatprep.subr.msk.bf16.mxu0 %vm1735_vm3, %v1734_v52 }
  0xc4   : > { %1739 = vmatpush3.bf16.msk.msra.mxu0 %vm1735_vm3, %v1734_v52 }
  0xc7   : > { %1732 = vmatmul.mubr.msk.f32.vlgmr.msra.gmra.mrb[0].mxu0 %vm244_vm0, %v231_v53  ;;  %v2202_v56 = vpop.permute.xlu1 %1003 }
  0xcb   : > { %v2207_v58 = vpop.permute.xlu1 %1019 }
  0xcf   : > { %v2213_v61 = vpop.permute.xlu1 %1027 }
  0xd1   : > { %v2253_v18 = vpop.permute.xlu0 %1011 }
  0xd3   : > { %v2217_v63 = vpop.permute.xlu1 %1035 }
  0xd4   : > { %2896 = vst [vmem:[#allocation9_spill] sm:$0xff] %v2217_v63 }
  0xd5   : > { %v2257_v20 = vpop.permute.xlu0 %1083 }
  0xd7   : > { %v2221_v1 = vpop.permute.xlu1 %1043 }
  0xd8   : > { %2897 = vst [vmem:[#allocation10_spill] sm:$0xff] %v2221_v1 }
  0xd9   : > { %v2261_v22 = vpop.permute.xlu0 %1099 }
  0xdb   : > { %v2225_v3 = vpop.permute.xlu1 %1051 }
  0xdc   : > { %2898 = vst [vmem:[#allocation11_spill] sm:$0xff] %v2225_v3 }
  0xdd   : > { %v2265_v24 = vpop.permute.xlu0 %1115 }
  0xdf   : > { %v2229_v6 = vpop.permute.xlu1 %1059 }
  0xe0   : > { %2899 = vst [vmem:[#allocation12_spill] sm:$0xff] %v2229_v6 }
  0xe2   : > { %v2277_v32 = vpop.permute.xlu0 %1147 }
  0xe3   : > { %v2233_v8 = vpop.permute.xlu1 %1067 }
  0xe6   : > { %v2285_v37 = vpop.permute.xlu0 %1171 }
  0xe7   : > { %v2237_v10 = vpop.permute.xlu1 %1075  ;;  %2904 = vst [vmem:[#allocation17_spill] sm:$0xff] %v2285_v37 }
  0xeb   : > { %v2241_v12 = vpop.permute.xlu1 %1091 }
  0xef   : > { %v2245_v14 = vpop.permute.xlu1 %1107 }
  0xf0   : > { %2900 = vst [vmem:[#allocation13_spill] sm:$0xff] %v2245_v14 }
  0xf3   : > { %v2249_v16 = vpop.permute.xlu1 %1123 }
  0xf4   : > { %2901 = vst [vmem:[#allocation14_spill] sm:$0xff] %v2249_v16 }
  0xf8   : > { %v2269_v26 = vpop.permute.xlu1 %1155 }
  0xfc   : > { %v2273_v29 = vpop.permute.xlu1 %1163 }
  0xfd   : > { %2902 = vst [vmem:[#allocation15_spill] sm:$0xff] %v2273_v29 }
 0x100   : > { %v2279_v33 = vpop.permute.xlu1 %1179 }
 0x101   : > { %2903 = vst [vmem:[#allocation16_spill] sm:$0xff] %v2279_v33 }
 0x19a   : > { %v1733_v40 = vpop.f32.mrb[0].mxu0 }
 0x19b   : > { %v325_v41 = vadd.f32 %v1733_v40, %v242_v55  ;;  %v319_v43 = vpop.f32.mrb[1].mxu0 }
 0x19c   : > { %v320_v46 = vadd.f32 %v319_v43, %v237_v54 }
 0x19d   : > { %v379_v49 = vcombine.high %v325_v41, %v325_v41  ;;  %v386_v50 = vrot.slane %v325_v41, %v2130_v5 }
 0x19e   : > { %v337_v51 = vrot.slane %v320_v46, %v2130_v5 }
 0x19f   : > { %v394_v52 = vcombine.high %v386_v50, %v386_v50  ;;  %v2292_v53 = vrot.slane %v386_v50, %v2130_v5  ;;  %v393_v15 = vrot.slane %v379_v49, %v2130_v5 }
 0x1a0   : > { %v2295_v17 = vrot.slane %v337_v51, %v2130_v5 }
 0x1a1   : > { %v469_v55 = vsel %vm444_vm4, %v2292_v53, 0.0  ;;  %v2301_v54 = vrot.slane %v394_v52, %v2130_v5  ;;  %v2307_v41 = vcombine.high %v2292_v53, %v2292_v53  ;;  %v2310_v43 = vrot.slane %v393_v15, %v2130_v5 }
 0x1a2   : > { %470 = vadd.xlane.f32.xlu1 %v469_v55  ;;  %v445_v40 = vsel %vm444_vm4, %v2295_v17, 0.0  ;;  %v2318_v52 = vcombine.high %v2295_v17, %v2295_v17  ;;  %v330_v55 = vcombine.high %v320_v46, %v320_v46  ;;  %v501_v4 = vmul.f32 %v2292_v53, %v2292_v53 }
 0x1a3   : > { %446 = vadd.xlane.f32.xlu0 %v445_v40  ;;  %v475_v49 = vsel %vm444_vm4, %v2307_v41, 0.0  ;;  %v472_v50 = vsel %vm444_vm4, %v2301_v54, 0.0  ;;  %v345_v40 = vcombine.high %v337_v51, %v337_v51  ;;  %v481_v7 = vsel %vm444_vm4, %v2310_v43, 0.0 }
 0x1a4   : > { %v395_v36 = vcombine.high %v393_v15, %v393_v15  ;;  %v2328_v2 = vcombine.high %v2301_v54, %v2301_v54  ;;  %v533_v51 = vsel %vm444_vm4, %v501_v4, 0.0  ;;  %v502_v4 = vmul.f32 %v2301_v54, %v2301_v54 }
 0x1a5   : > { %v2332_v46 = vrot.slane %v345_v40, %v2130_v5  ;;  %v2359_v39 = vcombine.high %v2310_v43, %v2310_v43 }
 0x1a6   : > { %476 = vadd.xlane.f32.xlu1 %v475_v49  ;;  %v451_v49 = vsel %vm444_vm4, %v2318_v52, 0.0  ;;  %v478_v15 = vsel %vm444_vm4, %v2328_v2, 0.0 }
 0x1a7   : > { %473 = vadd.xlane.f32.xlu0 %v472_v50  ;;  %v344_v50 = vrot.slane %v330_v55, %v2130_v5  ;;  %v2364_v62 = vcombine.high %v2332_v46, %v2332_v46 }
 0x1a9   : > { %v2341_v0 = vrot.slane %v344_v50, %v2130_v5 }
 0x1aa   : > { %482 = vadd.xlane.f32.xlu1 %v481_v7  ;;  %v2338_v7 = vrot.slane %v395_v36, %v2130_v5  ;;  %v493_v36 = vmul.f32 %v2295_v17, %v2295_v17 }
 0x1ab   : > { %452 = vadd.xlane.f32.xlu0 %v451_v49  ;;  %2905 = vst [vmem:[#allocation18_spill] sm:$0xff] %v2341_v0  ;;  %v448_v49 = vsel %vm444_vm4, %v2332_v46, 0.0  ;;  %v457_v40 = vsel %vm444_vm4, %v2341_v0, 0.0  ;;  %v497_v60 = vmul.f32 %v2341_v0, %v2341_v0 }
 0x1ac   : > { %v484_v55 = vsel %vm444_vm4, %v2338_v7, 0.0  ;;  %v506_v25 = vmul.f32 %v2338_v7, %v2338_v7 }
 0x1ae   : > { %534 = vadd.xlane.f32.xlu1 %v533_v51  ;;  %v536_v51 = vsel %vm444_vm4, %v502_v4, 0.0  ;;  %v487_v4 = vsel %vm444_vm4, %v2359_v39, 0.0 }
 0x1af   : > { %479 = vadd.xlane.f32.xlu0 %v478_v15  ;;  %v503_v15 = vmul.f32 %v2307_v41, %v2307_v41 }
 0x1b1   : > { %v539_v30 = vsel %vm444_vm4, %v503_v15, 0.0  ;;  %v2378_v15 = vcombine.high %v2341_v0, %v2341_v0 }
 0x1b2   : > { %449 = vadd.xlane.f32.xlu1 %v448_v49  ;;  %v509_v49 = vsel %vm444_vm4, %v493_v36, 0.0  ;;  %v454_v36 = vsel %vm444_vm4, %v2364_v62, 0.0 }
 0x1b3   : > { %485 = vadd.xlane.f32.xlu0 %v484_v55  ;;  %v346_v55 = vcombine.high %v344_v50, %v344_v50  ;;  %2907 = vst [vmem:[#allocation20_spill] sm:$0xff] %v2378_v15  ;;  %v499_v13 = vmul.f32 %v2378_v15, %v2378_v15 }
 0x1b5   : > { %v2373_v50 = vrot.slane %v346_v55, %v2130_v5  ;;  %v495_v55 = vmul.f32 %v2318_v52, %v2318_v52 }
 0x1b6   : > { %458 = vadd.xlane.f32.xlu1 %v457_v40  ;;  %v505_v40 = vmul.f32 %v2310_v43, %v2310_v43 }
 0x1b7   : > { %537 = vadd.xlane.f32.xlu0 %v536_v51  ;;  %2906 = vst [vmem:[#allocation19_spill] sm:$0xff] %v2373_v50 }
 0x1b8   : > { %v545_v51 = vsel %vm444_vm4, %v505_v40, 0.0 }
 0x1ba   : > { %510 = vadd.xlane.f32.xlu1 %v509_v49  ;;  %v494_v49 = vmul.f32 %v2332_v46, %v2332_v46 }
 0x1bb   : > { %540 = vadd.xlane.f32.xlu0 %v539_v30  ;;  %v460_v30 = vsel %vm444_vm4, %v2373_v50, 0.0 }
 0x1bc   : > { %v512_v40 = vsel %vm444_vm4, %v494_v49, 0.0  ;;  %v521_v49 = vsel %vm444_vm4, %v497_v60, 0.0  ;;  %v2412_v60 = vcombine.high %v2373_v50, %v2373_v50 }
 0x1be   : > { %488 = vadd.xlane.f32.xlu1 %v487_v4  ;;  %v463_v4 = vsel %vm444_vm4, %v2378_v15, 0.0  ;;  %2909 = vst [vmem:[#allocation22_spill] sm:$0xff] %v2412_v60 }
 0x1bf   : > { %455 = vadd.xlane.f32.xlu0 %v454_v36  ;;  %v2391_v36 = vcombine.high %v2338_v7, %v2338_v7 }
 0x1c1   : > { %2908 = vst [vmem:[#allocation21_spill] sm:$0xff] %v2391_v36 }
 0x1c2   : > { %546 = vadd.xlane.f32.xlu1 %v545_v51  ;;  %v515_v51 = vsel %vm444_vm4, %v495_v55, 0.0  ;;  %v507_v55 = vmul.f32 %v2359_v39, %v2359_v39 }
 0x1c3   : > { %461 = vadd.xlane.f32.xlu0 %v460_v30  ;;  %v490_v30 = vsel %vm444_vm4, %v2391_v36, 0.0 }
 0x1c6   : > { %464 = vadd.xlane.f32.xlu1 %v463_v4  ;;  %v504_v4 = vmul.f32 %v2328_v2, %v2328_v2 }
 0x1c7   : > { %513 = vadd.xlane.f32.xlu0 %v512_v40  ;;  %v548_v40 = vsel %vm444_vm4, %v506_v25, 0.0  ;;  %v508_v25 = vmul.f32 %v2391_v36, %v2391_v36 }
 0x1ca   : > { %516 = vadd.xlane.f32.xlu1 %v515_v51  ;;  %v542_v51 = vsel %vm444_vm4, %v504_v4, 0.0  ;;  %v466_v4 = vsel %vm444_vm4, %v2412_v60, 0.0 }
 0x1cb   : > { %491 = vadd.xlane.f32.xlu0 %v490_v30  ;;  %v551_v30 = vsel %vm444_vm4, %v507_v55, 0.0  ;;  %v554_v55 = vsel %vm444_vm4, %v508_v25, 0.0  ;;  %v2438_v25 = vpop.permute.xlu1 %1195 }
 0x1cc   : > { %2910 = vst [vmem:[#allocation23_spill] sm:$0xff] %v2438_v25 }
 0x1ce   : > { %522 = vadd.xlane.f32.xlu1 %v521_v49  ;;  %v527_v49 = vsel %vm444_vm4, %v499_v13, 0.0 }
 0x1cf   : > { %549 = vadd.xlane.f32.xlu0 %v548_v40  ;;  %v496_v40 = vmul.f32 %v2364_v62, %v2364_v62 }
 0x1d2   : > { %543 = vadd.xlane.f32.xlu1 %v542_v51  ;;  %v518_v51 = vsel %vm444_vm4, %v496_v40, 0.0 }
 0x1d3   : > { %552 = vadd.xlane.f32.xlu0 %v551_v30  ;;  %v498_v30 = vmul.f32 %v2373_v50, %v2373_v50 }
 0x1d5   : > { %v524_v13 = vsel %vm444_vm4, %v498_v30, 0.0 }
 0x1d6   : > { %528 = vadd.xlane.f32.xlu1 %v527_v49  ;;  %v500_v49 = vmul.f32 %v2412_v60, %v2412_v60 }
 0x1d7   : > { %467 = vadd.xlane.f32.xlu0 %v466_v4 }
 0x1d8   : > { %v530_v11 = vsel %vm444_vm4, %v500_v49, 0.0 }
 0x1da   : > { %555 = vadd.xlane.f32.xlu1 %v554_v55 }
 0x1db   : > { %519 = vadd.xlane.f32.xlu0 %v518_v51 }
 0x1df   : > { %525 = vadd.xlane.f32.xlu0 %v524_v13 }
 0x1e3   : > { %531 = vadd.xlane.f32.xlu0 %v530_v11  ;;  %v2440_v11 = vpop.permute.xlu0 %1187 }
 0x1e4   : > { %2911 = vst [vmem:[#allocation24_spill] sm:$0xff] %v2440_v11 }
 0x1eb   : > { %1211 = vperm.xlu1 %1801, %v2155_v28  }
 0x1ef   : > { %1227 = vperm.xlu1 %1801, %v2159_v31  }
 0x1f3   : > { %1243 = vperm.xlu1 %1801, %v2165_v35  }
 0x1f7   : > { %1259 = vperm.xlu1 %1801, %v2171_v38  }
 0x1f9   : > { %1203 = vperm.xlu0 %1800, %v2175_v42  }
 0x1fd   : > { %1219 = vperm.xlu0 %1800, %v2180_v44  }
 0x201   : > { %1235 = vperm.xlu0 %1800, %v2185_v45  }
 0x205   : > { %1251 = vperm.xlu0 %1800, %v2189_v47  }
 0x209   : > { %1267 = vperm.xlu0 %1800, %v2194_v48  }
 0x22f   : > { %v471_v28 = vpop.xlane.xlu1 %470 }
 0x230   : > { %v447_v31 = vpop.xlane.xlu0 %446 }
 0x233   : > { %v477_v4 = vpop.xlane.xlu1 %476 }
 0x234   : > { %v474_v35 = vpop.xlane.xlu0 %473 }
 0x235   : > { %v582_v38 = vrot.slane %v474_v35, 7 }
 0x237   : > { %v583_v42 = vsel %vm574_vm5, %v582_v38, %v471_v28  ;;  %v483_v44 = vpop.xlane.xlu1 %482 }
 0x238   : > { %v627_v45 = vsel %vm598_vm6, %v583_v42, 0.0  ;;  %v453_v40 = vpop.xlane.xlu0 %452 }
 0x239   : > { %v628_v47 = vrot.slane %v627_v45, 4 }
 0x23b   : > { %v629_v55 = vadd.f32 %v628_v47, %v627_v45  ;;  %v535_v48 = vpop.xlane.xlu1 %534 }
 0x23c   : > { %v480_v51 = vpop.xlane.xlu0 %479 }
 0x23d   : > { %v630_v30 = vrot.slane %v629_v55, 2  ;;  %v584_v13 = vrot.slane %v480_v51, 7 }
 0x23f   : > { %v631_v49 = vadd.f32 %v630_v30, %v629_v55  ;;  %v585_v21 = vsel %vm574_vm5, %v584_v13, %v477_v4  ;;  %v450_v23 = vpop.xlane.xlu1 %449 }
 0x240   : > { %v634_v27 = vsel %vm598_vm6, %v585_v21, 0.0  ;;  %v573_v34 = vrot.slane %v450_v23, 7  ;;  %v486_v35 = vpop.xlane.xlu0 %485 }
 0x241   : > { %v632_v19 = vrot.slane %v631_v49, 1  ;;  %v635_v28 = vrot.slane %v634_v27, 4  ;;  %v586_v38 = vrot.slane %v486_v35, 7 }
 0x242   : > { %v575_v42 = vsel %vm574_vm5, %v573_v34, %v447_v31 }
 0x243   : > { %v633_v59 = vadd.f32 %v632_v19, %v631_v49  ;;  %v636_v9 = vadd.f32 %v635_v28, %v634_v27  ;;  %v599_v45 = vsel %vm598_vm6, %v575_v42, 0.0  ;;  %v587_v47 = vsel %vm574_vm5, %v586_v38, %v483_v44  ;;  %v459_v51 = vpop.xlane.xlu1 %458 }
 0x244   : > { %v600_v55 = vrot.slane %v599_v45, 4  ;;  %v641_v4 = vsel %vm598_vm6, %v587_v47, 0.0  ;;  %v538_v30 = vpop.xlane.xlu0 %537 }
 0x245   : > { %v756_v13 = vmul.f32 0.03125, %v633_v59  ;;  %v637_v21 = vrot.slane %v636_v9, 2  ;;  %v642_v23 = vrot.slane %v641_v4, 4  ;;  %v679_v5 = vrot.slane %v538_v30, 7 }
 0x246   : > { %v601_v16 = vadd.f32 %v600_v55, %v599_v45 }
 0x247   : > { %v638_v36 = vadd.f32 %v637_v21, %v636_v9  ;;  %v643_v35 = vadd.f32 %v642_v23, %v641_v4  ;;  %v680_v34 = vsel %vm574_vm5, %v679_v5, %v535_v48  ;;  %v511_v19 = vpop.xlane.xlu1 %510  ;;  %v2455_v44 = vrot.slane %v756_v13, %v2205_v57 }
 0x248   : > { %v602_v27 = vrot.slane %v601_v16, 2  ;;  %v723_v31 = vsel %vm598_vm6, %v680_v34, 0.0  ;;  %v2452_v49 = vpop.xlane.xlu0 %540 }
 0x249   : > { %v639_v28 = vrot.slane %v638_v36, 1  ;;  %v644_v38 = vrot.slane %v643_v35, 2  ;;  %v724_v59 = vrot.slane %v723_v31, 4 }
 0x24a   : > { %v603_v42 = vadd.f32 %v602_v27, %v601_v16 }
 0x24b   : > { %v640_v47 = vadd.f32 %v639_v28, %v638_v36  ;;  %v645_v30 = vadd.f32 %v644_v38, %v643_v35  ;;  %v725_v45 = vadd.f32 %v724_v59, %v723_v31  ;;  %v489_v9 = vpop.xlane.xlu1 %488 }
 0x24c   : > { %v604_v55 = vrot.slane %v603_v42, 1  ;;  %v456_v4 = vpop.xlane.xlu0 %455 }
 0x24d   : > { %v2457_v5 = vmul.f32 0.03125, %v640_v47  ;;  %v646_v48 = vrot.slane %v645_v30, 1  ;;  %v726_v21 = vrot.slane %v725_v45, 2  ;;  %v576_v23 = vrot.slane %v456_v4, 7 }
 0x24e   : > { %v605_v34 = vadd.f32 %v604_v55, %v603_v42 }
 0x24f   : > { %v647_v14 = vadd.f32 %v646_v48, %v645_v30  ;;  %v727_v6 = vadd.f32 %v726_v21, %v725_v45  ;;  %v547_v3 = vpop.xlane.xlu1 %546  ;;  %v577_v60 = vsel %vm574_vm5, %v576_v23, %v453_v40  ;;  %v2462_v16 = vrot.slane %v2457_v5, %v2205_v57 }
 0x250   : > { %v752_v25 = vmul.f32 0.03125, %v605_v34  ;;  %v462_v33 = vpop.xlane.xlu0 %461  ;;  %v606_v28 = vsel %vm598_vm6, %v577_v60, 0.0  ;;  %v772_v40 = vmul.f32 %v756_v13, %v756_v13 }
 0x251   : > { %v758_v36 = vmul.f32 0.03125, %v647_v14  ;;  %v728_v35 = vrot.slane %v727_v6, 1  ;;  %v578_v30 = vrot.slane %v462_v33, 7  ;;  %v607_v55 = vrot.slane %v606_v28, 4 }
 0x252   : > { %v2465_v27 = vrot.slane %v752_v25, %v2205_v57 }
 0x253   : > { %v729_v31 = vadd.f32 %v728_v35, %v727_v6  ;;  %v2468_v38 = vpop.xlane.xlu1 %464  ;;  %v2471_v42 = vrot.slane %v758_v36, %v2205_v57  ;;  %v579_v23 = vsel %vm574_vm5, %v578_v30, %v459_v51  ;;  %v608_v35 = vadd.f32 %v607_v55, %v606_v28 }
 0x254   : > { %v514_v59 = vpop.xlane.xlu0 %513 }
 0x255   : > { %v764_v47 = vmul.f32 0.03125, %v729_v31  ;;  %v671_v45 = vrot.slane %v514_v59, 7  ;;  %v613_v31 = vsel %vm598_vm6, %v579_v23, 0.0 }
 0x257   : > { %v780_v4 = vsub.f32 %v764_v47, %v772_v40  ;;  %v672_v14 = vsel %vm574_vm5, %v671_v45, %v511_v19  ;;  %v2474_v48 = vpop.xlane.xlu1 %516  ;;  %v609_v47 = vrot.slane %v608_v35, 2 }
 0x258   : > { %v695_v6 = vsel %vm598_vm6, %v672_v14, 0.0  ;;  %v492_v21 = vpop.xlane.xlu0 %491 }
 0x259   : > { %v788_v60 = vmax.f32 %v780_v4, 0.0  ;;  %v696_v34 = vrot.slane %v695_v6, 4  ;;  %v588_v15 = vrot.slane %v492_v21, 7  ;;  %v614_v4 = vrot.slane %v613_v31, 4 }
 0x25b   : > { %v697_v1 = vadd.f32 %v696_v34, %v695_v6  ;;  %v2478_v13 = vpop.xlane.xlu1 %522  ;;  %v796_v33 = vadd.f32 1e-05, %v788_v60  ;;  %v589_v59 = vsel %vm574_vm5, %v588_v15, %v489_v9  ;;  %v610_v60 = vadd.f32 %v609_v47, %v608_v35 }
 0x25c   : > { %v550_v19 = vpop.xlane.xlu0 %549  ;;  %v648_v45 = vsel %vm598_vm6, %v589_v59, 0.0  ;;  %v615_v34 = vadd.f32 %v614_v4, %v613_v31  ;;  %v774_v31 = vmul.f32 %v758_v36, %v758_v36 }
 0x25d   : > { %v698_v40 = vrot.slane %v697_v1, 2  ;;  %v683_v14 = vrot.slane %v550_v19, 7  ;;  %1804 = vrsqrt.f32 %v796_v33  ;;  %v649_v28 = vrot.slane %v648_v45, 4 }
 0x25e   : > { %v611_v4 = vrot.slane %v610_v60, 1 }
 0x25f   : > { %v699_v63 = vadd.f32 %v698_v40, %v697_v1  ;;  %v544_v51 = vpop.xlane.xlu1 %543  ;;  %v684_v30 = vsel %vm574_vm5, %v683_v14, %v547_v3  ;;  %v650_v23 = vadd.f32 %v649_v28, %v648_v45  ;;  %v880_v1 = vsub.f32 %v2292_v53, %v2455_v44 }
 0x260   : > { %v681_v55 = vrot.slane %v544_v51, 7  ;;  %v553_v6 = vpop.xlane.xlu0 %552  ;;  %v737_v15 = vsel %vm598_vm6, %v684_v30, 0.0  ;;  %v2493_v3 = vmul.f32 %v2457_v5, %v2457_v5  ;;  %v616_v28 = vrot.slane %v615_v34, 2 }
 0x261   : > { %v700_v21 = vrot.slane %v699_v63, 1  ;;  %v738_v19 = vrot.slane %v737_v15, 4  ;;  %v651_v33 = vrot.slane %v650_v23, 2  ;;  %v612_v29 = vadd.f32 %v611_v4, %v610_v60 }
 0x262   : > { %v682_v9 = vsel %vm574_vm5, %v681_v55, %v2452_v49  ;;  %v768_v49 = vmul.f32 %v752_v25, %v752_v25 }
 0x263   : > { %v701_v59 = vadd.f32 %v700_v21, %v699_v63  ;;  %v2487_v11 = vpop.xlane.xlu1 %528  ;;  %v730_v35 = vsel %vm598_vm6, %v682_v9, 0.0  ;;  %v739_v45 = vadd.f32 %v738_v19, %v737_v15  ;;  %v652_v9 = vadd.f32 %v651_v33, %v650_v23 }
 0x264   : > { %v468_v40 = vpop.xlane.xlu0 %467  ;;  %v731_v53 = vrot.slane %v730_v35, 4  ;;  %v617_v33 = vadd.f32 %v616_v28, %v615_v34 }
 0x265   : > { %v760_v63 = vmul.f32 0.03125, %v701_v59  ;;  %v580_v51 = vrot.slane %v468_v40, 7  ;;  %v740_v55 = vrot.slane %v739_v45, 2 }
 0x266   : > { %v732_v37 = vadd.f32 %v731_v53, %v730_v35  ;;  %v653_v35 = vrot.slane %v652_v9, 1 }
 0x267   : > { %v776_v30 = vsub.f32 %v760_v63, %v768_v49  ;;  %v556_v21 = vpop.xlane.xlu1 %555  ;;  %v581_v25 = vsel %vm574_vm5, %v580_v51, %v2468_v38  ;;  %v741_v19 = vadd.f32 %v740_v55, %v739_v45  ;;  %v1805_v40 = vpop.eup %1804  ;;  %v2513_v55 = vmul.f32 0.03125, %v612_v29 }
 0x268   : > { %v685_v36 = vrot.slane %v556_v21, 7  ;;  %v520_v15 = vpop.xlane.xlu0 %519  ;;  %v620_v47 = vsel %vm598_vm6, %v581_v25, 0.0  ;;  %v733_v50 = vrot.slane %v732_v37, 2  ;;  %v2511_v4 = vrot.slane %v1805_v40, %v2205_v57 }
 0x269   : > { %v784_v59 = vmax.f32 %v776_v30, 0.0  ;;  %v673_v14 = vrot.slane %v520_v15, 7  ;;  %v621_v5 = vrot.slane %v620_v47, 4  ;;  %v742_v0 = vrot.slane %v741_v19, 1 }
 0x26a   : > { %v686_v49 = vsel %vm574_vm5, %v685_v36, %v553_v6  ;;  %v734_v53 = vadd.f32 %v733_v50, %v732_v37  ;;  %v896_v34 = vmul.f32 %v880_v1, %v2511_v4  ;;  %v654_v50 = vadd.f32 %v653_v35, %v652_v9 }
 0x26b   : > { %v792_v63 = vadd.f32 1e-05, %v784_v59  ;;  %v744_v23 = vsel %vm598_vm6, %v686_v49, 0.0  ;;  %v674_v38 = vsel %vm574_vm5, %v673_v14, %v2474_v48  ;;  %v1212_v51 = vpop.permute.xlu1 %1211  ;;  %v743_v30 = vadd.f32 %v742_v0, %v741_v19 }
 0x26c   : > { %v745_v45 = vrot.slane %v744_v23, 4  ;;  %v702_v60 = vsel %vm598_vm6, %v674_v38, 0.0  ;;  %v526_v6 = vpop.xlane.xlu0 %525  ;;  %v735_v21 = vrot.slane %v734_v53, 1  ;;  %v622_v25 = vadd.f32 %v621_v5, %v620_v47 }
 0x26d   : > { %1806 = vrsqrt.f32 %v792_v63  ;;  %v766_v15 = vmul.f32 0.03125, %v743_v30  ;;  %v703_v48 = vrot.slane %v702_v60, 4  ;;  %v1217_v37 = vrot.slane %v1212_v51, %v2205_v57 }
 0x26e   : > { %v746_v36 = vadd.f32 %v745_v45, %v744_v23  ;;  %v736_v14 = vadd.f32 %v735_v21, %v734_v53  ;;  %v675_v28 = vrot.slane %v526_v6, 7  ;;  %v618_v59 = vrot.slane %v617_v33, 1 }
 0x26f   : > { %v782_v19 = vsub.f32 %v766_v15, %v774_v31  ;;  %v704_v40 = vadd.f32 %v703_v48, %v702_v60  ;;  %v2912_v29 = vrot.slane %v2233_v8, %v2205_v57  ;;  %v623_v47 = vrot.slane %v622_v25, 2 }
 0x270   : > { %v747_v0 = vrot.slane %v746_v36, 2  ;;  %v765_v63 = vmul.f32 0.03125, %v736_v14  ;;  %v676_v23 = vsel %vm574_vm5, %v675_v28, %v2478_v13  ;;  %v2525_v35 = vmul.f32 0.03125, %v654_v50  ;;  %v532_v8 = vpop.xlane.xlu0 %531 }
 0x271   : > { %v1138_v49 = vmul.f32 %v2912_v29, %v896_v34  ;;  %v790_v1 = vmax.f32 %v782_v19, 0.0  ;;  %v705_v38 = vrot.slane %v704_v40, 2  ;;  %v709_v9 = vsel %vm598_vm6, %v676_v23, 0.0 }
 0x272   : > { %v748_v5 = vadd.f32 %v747_v0, %v746_v36  ;;  %v781_v31 = vsub.f32 %v765_v63, %v2493_v3  ;;  %v710_v51 = vrot.slane %v709_v9, 4  ;;  %v769_v30 = vmul.f32 %v2513_v55, %v2513_v55 }
 0x273   : > { %v2522_v45 = vadd.f32 %v1217_v37, %v1138_v49  ;;  %v798_v60 = vadd.f32 1e-05, %v790_v1  ;;  %v706_v6 = vadd.f32 %v705_v38, %v704_v40  ;;  %v619_v21 = vadd.f32 %v618_v59, %v617_v33 }
 0x274   : > { %v749_v53 = vrot.slane %v748_v5, 1  ;;  %v789_v36 = vmax.f32 %v781_v31, 0.0  ;;  %v711_v48 = vadd.f32 %v710_v51, %v709_v9  ;;  %v624_v37 = vadd.f32 %v623_v47, %v622_v25 }
 0x275   : > { %v1298_v13 = vmin.f32 %v2522_v45, 20.0  ;;  %1808 = vrsqrt.f32 %v798_v60  ;;  %v707_v50 = vrot.slane %v706_v6, 1  ;;  %v677_v14 = vrot.slane %v532_v8, 7  ;;  %v2549_v8 = vpop.permute.xlu1 %1227 }
 0x276   : > { %v750_v15 = vadd.f32 %v749_v53, %v748_v5  ;;  %v775_v0 = vmul.f32 %v2525_v35, %v2525_v35  ;;  %v797_v28 = vadd.f32 1e-05, %v789_v36  ;;  %v712_v49 = vrot.slane %v711_v48, 2 }
 0x277   : > { %v1807_v34 = vpop.eup %1806  ;;  %v708_v29 = vadd.f32 %v707_v50, %v706_v6  ;;  %v1322_v40 = vmul.f32 1.442695, %v1298_v13  ;;  %v678_v33 = vsel %vm574_vm5, %v677_v14, %v2487_v11  ;;  %v2913_v59 = vsub.f32 %v2295_v17, %v2465_v27 }
 0x278   : > { %v843_v3 = vrot.slane %v1807_v34, %v2205_v57  ;;  %v767_v19 = vmul.f32 0.03125, %v750_v15  ;;  %v2914_v25 = vsub.f32 %v2332_v46, %v2465_v27  ;;  %1810 = vrsqrt.f32 %v797_v28  ;;  %v2563_v34 = vpop.permute.xlu0 %1203 }
 0x279   : > { %v625_v23 = vrot.slane %v624_v37, 1  ;;  %v761_v1 = vmul.f32 0.03125, %v708_v29  ;;  %v713_v38 = vadd.f32 %v712_v49, %v711_v48  ;;  %v716_v9 = vsel %vm598_vm6, %v678_v33, 0.0 }
 0x27a   : > { %v888_v63 = vmul.f32 %v2913_v59, %v843_v3  ;;  %v889_v47 = vmul.f32 %v2914_v25, %v843_v3  ;;  %v783_v5 = vsub.f32 %v767_v19, %v775_v0  ;;  %v2915_v31 = vrot.slane %v2202_v56, %v2205_v57  ;;  %v1244_v59 = vpop.permute.xlu1 %1243 }
 0x27b   : > { %v2916_v11 = vrot.slane %v2253_v18, %v2205_v57  ;;  %v717_v46 = vrot.slane %v716_v9, 4  ;;  %v2551_v27 = vmul.f32 0.03125, %v619_v21  ;;  %v777_v60 = vsub.f32 %v761_v1, %v769_v30 }
 0x27c   : > { %v1130_v53 = vmul.f32 %v2915_v31, %v888_v63  ;;  %v791_v51 = vmax.f32 %v783_v5, 0.0  ;;  %1812 = vpow2.f32 %v1322_v40  ;;  %v714_v6 = vrot.slane %v713_v38, 1 }
 0x27d   : > { %v1131_v17 = vmul.f32 %v2916_v11, %v889_v47  ;;  %v2917_v13 = vrot.slane %v2277_v32, %v2205_v57  ;;  %v2918_v56 = vrot.slane %v2269_v26, %v2205_v57  ;;  %v718_v48 = vadd.f32 %v717_v46, %v716_v9 }
 0x27e   : > { %v799_v18 = vadd.f32 1e-05, %v791_v51  ;;  %v626_v50 = vadd.f32 %v625_v23, %v624_v37  ;;  %v785_v21 = vmax.f32 %v777_v60, 0.0  ;;  %v715_v14 = vadd.f32 %v714_v6, %v713_v38  ;;  %v1220_v38 = vpop.permute.xlu0 %1219 }
 0x27f   : > { %v2556_v36 = vadd.f32 %v2917_v13, %v1130_v53  ;;  %v2561_v15 = vadd.f32 %v2918_v56, %v1131_v17  ;;  %v882_v30 = vsub.f32 %v2307_v41, %v2462_v16  ;;  %v719_v0 = vrot.slane %v718_v48, 2  ;;  %v1809_v28 = vpop.eup %1808 }
 0x280   : > { %1814 = vrsqrt.f32 %v799_v18  ;;  %v770_v26 = vmul.f32 %v2551_v27, %v2551_v27  ;;  %v793_v19 = vadd.f32 1e-05, %v785_v21  ;;  %v762_v29 = vmul.f32 0.03125, %v715_v14 }
 0x281   : > { %v1290_v3 = vmin.f32 %v2556_v36, 20.0  ;;  %v1291_v32 = vmin.f32 %v2561_v15, 20.0  ;;  %v884_v37 = vsub.f32 %v2310_v43, %v2471_v42  ;;  %v720_v33 = vadd.f32 %v719_v0, %v718_v48  ;;  %v1260_v0 = vpop.permute.xlu1 %1259 }
 0x282   : > { %v867_v41 = vrot.slane %v1809_v28, %v2205_v57  ;;  %v2576_v63 = vrot.slane %v2513_v55, %v2205_v57  ;;  %1816 = vrsqrt.f32 %v793_v19  ;;  %v778_v25 = vsub.f32 %v762_v29, %v770_v26  ;;  %v1811_v5 = vpop.eup %1810  ;;  %v1236_v19 = vpop.permute.xlu0 %1235 }
 0x283   : > { %v1306_v40 = vmul.f32 1.442695, %v1290_v3  ;;  %v1308_v49 = vmul.f32 1.442695, %v1291_v32  ;;  %v883_v47 = vsub.f32 %v2328_v2, %v2462_v16  ;;  %v2580_v23 = vmul.f32 0.03125, %v626_v50 }
 0x284   : > { %v721_v43 = vrot.slane %v720_v33, 1  ;;  %v900_v1 = vmul.f32 %v884_v37, %v867_v41  ;;  %v786_v9 = vmax.f32 %v778_v25, 0.0  ;;  %v863_v31 = vrot.slane %v1811_v5, %v2205_v57 }
 0x285   : > { %1818 = vpow2.f32 %v1306_v40  ;;  %v1249_v53 = vrot.slane %v1244_v59, %v2205_v57  ;;  %v2919_v11 = vrot.slane %v2261_v22, %v2205_v57  ;;  %v2589_v2 = vrot.slane %v2525_v35, %v2205_v57 }
 0x286   : > { %1820 = vpow2.f32 %v1308_v49  ;;  %v722_v55 = vadd.f32 %v721_v43, %v720_v33  ;;  %v2920_v16 = vsub.f32 %v2301_v54, %v2455_v44  ;;  %v1813_v46 = vpop.eup %1812  ;;  %v794_v60 = vadd.f32 1e-05, %v786_v9 }
 0x287   : > { %v1142_v17 = vmul.f32 %v2919_v11, %v900_v1  ;;  %v898_v6 = vmul.f32 %v882_v30, %v863_v31  ;;  %v1225_v13 = vrot.slane %v1220_v38, %v2205_v57  ;;  %v899_v56 = vmul.f32 %v883_v47, %v863_v31 }
 0x288   : > { %v897_v51 = vmul.f32 %v2920_v16, %v2511_v4  ;;  %v771_v18 = vmul.f32 %v2580_v23, %v2580_v23  ;;  %v1233_v22 = vrot.slane %v2549_v8, %v2205_v57  ;;  %v763_v48 = vmul.f32 0.03125, %v722_v55 }
 0x289   : > { %v2600_v35 = vadd.f32 %v1249_v53, %v1142_v17  ;;  %1822 = vrsqrt.f32 %v794_v60  ;;  %v2921_v54 = vrot.slane %v2257_v20, %v2205_v57  ;;  %v2922_v4 = vrot.slane %v2237_v10, %v2205_v57 }
 0x28a   : > { %v2923_v21 = vrot.slane %v2241_v12, %v2205_v57  ;;  %v1815_v30 = vpop.eup %1814  ;;  %v874_v8 = vsub.f32 %v2318_v52, %v2576_v63  ;;  %v1346_v3 = vadd.f32 1.0, %v1813_v46  ;;  %v779_v32 = vsub.f32 %v763_v48, %v771_v18 }
 0x28b   : > { %v1140_v44 = vmul.f32 %v2921_v54, %v898_v6  ;;  %v1139_v50 = vmul.f32 %v2922_v4, %v897_v51  ;;  %v885_v28 = vsub.f32 %v2338_v7, %v2471_v42  ;;  %v2618_v26 = vrot.slane %v1815_v30, %v2205_v57  ;;  %v2927_v6 = vld [vmem:[#allocation18_spill] sm:$0xff]  ;;  %v2929_v54 = vld [vmem:[#allocation15_spill] sm:$0xff] }
 0x28c   : > { %v1141_v14 = vmul.f32 %v2923_v21, %v899_v56  ;;  %v886_v10 = vsub.f32 %v2359_v39, %v2589_v2  ;;  %v875_v52 = vsub.f32 %v2364_v62, %v2576_v63  ;;  %v819_v29 = vrot.slane %v2551_v27, %v2205_v57  ;;  %v1817_v7 = vpop.eup %1816  ;;  %v2928_v56 = vld [vmem:[#allocation19_spill] sm:$0xff] }
 0x28d   : > { %v2615_v20 = vadd.f32 %v1233_v22, %v1140_v44  ;;  %v2622_v12 = vadd.f32 %v1225_v13, %v1139_v50  ;;  %v787_v37 = vmax.f32 %v779_v32, 0.0  ;;  %v2628_v40 = vmul.f32 %v885_v28, %v867_v41  ;;  %v2931_v50 = vld [vmem:[#allocation17_spill] sm:$0xff]  ;;  %v2933_v28 = vld [vmem:[#allocation24_spill] sm:$0xff] }
 0x28e   : > { %v902_v49 = vmul.f32 %v886_v10, %v2618_v26  ;;  %v1265_v33 = vrot.slane %v1260_v0, %v2205_v57  ;;  %v847_v25 = vrot.slane %v1817_v7, %v2205_v57  ;;  %v2635_v47 = vmul.f32 %v1346_v3, %v1346_v3  ;;  %v2934_v7 = vld [vmem:[#allocation9_spill] sm:$0xff] }
 0x28f   : > { %v1300_v42 = vmin.f32 %v2615_v20, 20.0  ;;  %v1299_v39 = vmin.f32 %v2622_v12, 20.0  ;;  %v1819_v59 = vpop.eup %1818  ;;  %v795_v62 = vadd.f32 1e-05, %v787_v37  ;;  %v1241_v27 = vrot.slane %v1236_v19, %v2205_v57 }
 0x290   : > { %v1821_v63 = vpop.eup %1820  ;;  %v2924_v5 = vrot.slane %v2265_v24, %v2205_v57  ;;  %v1338_v1 = vadd.f32 1.0, %v1819_v59  ;;  %v890_v9 = vmul.f32 %v874_v8, %v847_v25  ;;  %v891_v31 = vmul.f32 %v875_v52, %v847_v25  ;;  %v2938_v25 = vld [vmem:[#allocation20_spill] sm:$0xff] }
 0x291   : > { %v1326_v41 = vmul.f32 1.442695, %v1300_v42  ;;  %v1324_v38 = vmul.f32 1.442695, %v1299_v39  ;;  %1824 = vrsqrt.f32 %v795_v62  ;;  %v1339_v53 = vadd.f32 1.0, %v1821_v63 }
 0x292   : > { %v1144_v43 = vmul.f32 %v2924_v5, %v902_v49  ;;  %v1354_v11 = vmul.f32 %v1338_v1, %v1338_v1  ;;  %v2643_v17 = vadd.f32 %v1241_v27, %v1141_v14  ;;  %v2925_v16 = vrot.slane %v2207_v58, %v2205_v57  ;;  %v2936_v49 = vld [vmem:[#allocation10_spill] sm:$0xff]  ;;  %v2939_v27 = vld [vmem:[#allocation16_spill] sm:$0xff] }
 0x293   : > { %1826 = vpow2.f32 %v1326_v41  ;;  %v2926_v24 = vrot.slane %v2213_v61, %v2205_v57  ;;  %v1823_v60 = vpop.eup %1822  ;;  %v876_v13 = vsub.f32 %v2927_v6, %v819_v29  ;;  %v877_v18 = vsub.f32 %v2928_v56, %v819_v29 }
 0x294   : > { %v2641_v55 = vadd.f32 %v1265_v33, %v1144_v43  ;;  %v1132_v51 = vmul.f32 %v2925_v16, %v890_v9  ;;  %v1410_v22 = vadd.f32 1.0, %v2635_v47  ;;  %v1355_v48 = vmul.f32 %v1339_v53, %v1339_v53  ;;  %v2941_v9 = vld [vmem:[#allocation22_spill] sm:$0xff] }
 0x295   : > { %v1133_v46 = vmul.f32 %v2926_v24, %v891_v31  ;;  %v2930_v44 = vrot.slane %v2929_v54, %v2205_v57  ;;  %v2932_v58 = vrot.slane %v2931_v50, %v2205_v57  ;;  %v851_v61 = vrot.slane %v1823_v60, %v2205_v57  ;;  %v2942_v24 = vld [vmem:[#allocation23_spill] sm:$0xff] }
 0x296   : > { %1828 = vpow2.f32 %v1324_v38  ;;  %v823_v14 = vrot.slane %v2580_v23, %v2205_v57  ;;  %v1402_v30 = vadd.f32 1.0, %v1354_v11  ;;  %v1193_v10 = vrot.slane %v2933_v28, %v2205_v57 }
 0x297   : > { %v2657_v4 = vadd.f32 %v2930_v44, %v1132_v51  ;;  %v2662_v21 = vadd.f32 %v2932_v58, %v1133_v46  ;;  %v892_v32 = vmul.f32 %v876_v13, %v851_v61  ;;  %v893_v0 = vmul.f32 %v877_v18, %v851_v61  ;;  %v2943_v44 = vld [vmem:[#allocation11_spill] sm:$0xff]  ;;  %v2945_v61 = vld [vmem:[#allocation12_spill] sm:$0xff] }
 0x298   : > { %1830 = vrcp.f32 %v1410_v22  ;;  %v1302_v19 = vmin.f32 %v2600_v35, 20.0  ;;  %v1403_v52 = vadd.f32 1.0, %v1355_v48  ;;  %v2935_v42 = vrot.slane %v2934_v7, %v2205_v57 }
 0x299   : > { %v1292_v8 = vmin.f32 %v2657_v4, 20.0  ;;  %v1293_v3 = vmin.f32 %v2662_v21, 20.0  ;;  %v2937_v33 = vrot.slane %v2936_v49, %v2205_v57  ;;  %1832 = vrcp.f32 %v1402_v30 }
 0x29a   : > { %v1134_v23 = vmul.f32 %v2935_v42, %v892_v32  ;;  %v878_v62 = vsub.f32 %v2938_v25, %v823_v14  ;;  %v2940_v63 = vrot.slane %v2939_v27, %v2205_v57  ;;  %v1330_v1 = vmul.f32 1.442695, %v1302_v19 }
 0x29b   : > { %v1310_v29 = vmul.f32 1.442695, %v1292_v8  ;;  %v1312_v37 = vmul.f32 1.442695, %v1293_v3  ;;  %v1135_v39 = vmul.f32 %v2937_v33, %v893_v0  ;;  %v1825_v59 = vpop.eup %1824  ;;  %v879_v31 = vsub.f32 %v2941_v9, %v823_v14 }
 0x29c   : > { %v2682_v41 = vadd.f32 %v2940_v63, %v1134_v23  ;;  %v855_v38 = vrot.slane %v1825_v59, %v2205_v57  ;;  %v1301_v51 = vmin.f32 %v2643_v17, 20.0  ;;  %v1201_v46 = vrot.slane %v2942_v24, %v2205_v57 }
 0x29d   : > { %1834 = vpow2.f32 %v1310_v29  ;;  %v2684_v5 = vadd.f32 %v1193_v10, %v1135_v39  ;;  %v1827_v43 = vpop.eup %1826  ;;  %v1700_v54 = vadd.f32 -1.0, %v1354_v11  ;;  %v2944_v50 = vrot.slane %v2943_v44, %v2205_v57 }
 0x29e   : > { %1836 = vpow2.f32 %v1312_v37  ;;  %v1294_v53 = vmin.f32 %v2682_v41, 20.0  ;;  %v894_v60 = vmul.f32 %v878_v62, %v855_v38  ;;  %v895_v6 = vmul.f32 %v879_v31, %v855_v38 }
 0x29f   : > { %v1295_v16 = vmin.f32 %v2684_v5, 20.0  ;;  %1838 = vrcp.f32 %v1403_v52  ;;  %v1348_v56 = vadd.f32 1.0, %v1827_v43  ;;  %v2946_v14 = vrot.slane %v2945_v61, %v2205_v57 }
 0x2a0   : > { %v1829_v13 = vpop.eup %1828  ;;  %v1314_v18 = vmul.f32 1.442695, %v1294_v53  ;;  %1840 = vpow2.f32 %v1330_v1  ;;  %v1136_v58 = vmul.f32 %v2944_v50, %v894_v60  ;;  %v1209_v8 = vrot.slane %v2563_v34, %v2205_v57  ;;  %v2947_v34 = vld [vmem:[#allocation13_spill] sm:$0xff] }
 0x2a1   : > { %v1316_v22 = vmul.f32 1.442695, %v1295_v16  ;;  %v1137_v30 = vmul.f32 %v2946_v14, %v895_v6  ;;  %v1304_v3 = vmin.f32 %v2641_v55, 20.0  ;;  %v1701_v32 = vadd.f32 -1.0, %v1355_v48 }
 0x2a2   : > { %1842 = vpow2.f32 %v1314_v18  ;;  %v1328_v0 = vmul.f32 1.442695, %v1301_v51  ;;  %v1831_v28 = vpop.eup %1830  ;;  %v2702_v10 = vadd.f32 %v1201_v46, %v1136_v58  ;;  %v1347_v19 = vadd.f32 1.0, %v1829_v13  ;;  %v1252_v51 = vpop.permute.xlu0 %1251 }
 0x2a3   : > { %1844 = vpow2.f32 %v1316_v22  ;;  %v2704_v11 = vadd.f32 %v1209_v8, %v1137_v30  ;;  %v1708_v52 = vadd.f32 -1.0, %v2635_v47  ;;  %v2707_v29 = vmul.f32 %v1348_v56, %v1348_v56  ;;  %v1833_v48 = vpop.eup %1832 }
 0x2a4   : > { %v1386_v37 = vmul.f32 %v1700_v54, %v2556_v36  ;;  %v2948_v7 = vrot.slane %v2947_v34, %v2205_v57  ;;  %v1296_v23 = vmin.f32 %v2702_v10, 20.0  ;;  %v1334_v39 = vmul.f32 1.442695, %v1304_v3 }
 0x2a5   : > { %v1297_v49 = vmin.f32 %v2704_v11, 20.0  ;;  %v1387_v59 = vmul.f32 %v1701_v32, %v2561_v15  ;;  %1846 = vpow2.f32 %v1328_v0  ;;  %v1363_v43 = vmul.f32 %v1347_v19, %v1347_v19 }
 0x2a6   : > { %v1143_v42 = vmul.f32 %v2948_v7, %v2628_v40  ;;  %v1419_v25 = vmul.f32 %v1833_v48, %v1386_v37  ;;  %v1318_v62 = vmul.f32 1.442695, %v1296_v23  ;;  %v1394_v38 = vmul.f32 %v1708_v52, %v2522_v45 }
 0x2a7   : > { %v1835_v33 = vpop.eup %1834  ;;  %v1320_v63 = vmul.f32 1.442695, %v1297_v49  ;;  %v1412_v40 = vadd.f32 1.0, %v2707_v29  ;;  %vm1450_vm7 = vcmp.gt.f32.partialorder %v2556_v36, 20.0  ;;  %vm1451_vm8 = vcmp.gt.f32.partialorder %v2561_v15, 20.0 }
 0x2a8   : > { %v1837_v47 = vpop.eup %1836  ;;  %v1340_v27 = vadd.f32 1.0, %v1835_v33  ;;  %1848 = vpow2.f32 %v1318_v62  ;;  %v2721_v16 = vsel %vm1450_vm7, %v2556_v36, %v1419_v25  ;;  %v1435_v24 = vmul.f32 %v1831_v28, %v1394_v38  ;;  %v2949_v28 = vld [vmem:[#allocation21_spill] sm:$0xff] }
 0x2a9   : > { %v1839_v1 = vpop.eup %1838  ;;  %v1341_v9 = vadd.f32 1.0, %v1837_v47  ;;  %1850 = vpow2.f32 %v1334_v39  ;;  %v1411_v56 = vadd.f32 1.0, %v1363_v43  ;;  %v1257_v54 = vrot.slane %v1252_v51, %v2205_v57 }
 0x2aa   : > { %v1356_v31 = vmul.f32 %v1340_v27, %v1340_v27  ;;  %v1421_v53 = vmul.f32 %v1839_v1, %v1387_v59  ;;  %v1841_v60 = vpop.eup %1840  ;;  %1852 = vpow2.f32 %v1320_v63  ;;  %vm1458_vm9 = vcmp.gt.f32.partialorder %v2522_v45, 20.0  ;;  %v2950_v27 = vld [vmem:[#allocation14_spill] sm:$0xff] }
 0x2ab   : > { %v1357_v46 = vmul.f32 %v1341_v9, %v1341_v9  ;;  %1854 = vrcp.f32 %v1412_v40  ;;  %v1350_v58 = vadd.f32 1.0, %v1841_v60  ;;  %v2732_v30 = vsel %vm1458_vm9, %v2522_v45, %v1435_v24  ;;  %v1268_v45 = vpop.permute.xlu0 %1267 }
 0x2ac   : > { %v1404_v6 = vadd.f32 1.0, %v1356_v31  ;;  %v2725_v13 = vsel %vm1451_vm8, %v2561_v15, %v1421_v53  ;;  %v1843_v18 = vpop.eup %1842  ;;  %v2734_v3 = vadd.f32 %v1257_v54, %v1143_v42  ;;  %vm1452_vm10 = vcmp.gt.f32.partialorder %v2657_v4, 20.0 }
 0x2ad   : > { %v1405_v22 = vadd.f32 1.0, %v1357_v46  ;;  %v1498_v36 = vcombine.low %v2721_v16, %v2725_v13  ;;  %v1845_v44 = vpop.eup %1844  ;;  %v1342_v50 = vadd.f32 1.0, %v1843_v18  ;;  %v887_v19 = vsub.f32 %v2949_v28, %v2589_v2 }
 0x2ae   : > { %1856 = vrcp.f32 %v1404_v6  ;;  %v1343_v61 = vadd.f32 1.0, %v1845_v44  ;;  %v2739_v52 = vmul.f32 %v1350_v58, %v1350_v58  ;;  %v1702_v37 = vadd.f32 -1.0, %v1356_v31 }
 0x2af   : > { %1858 = vrcp.f32 %v1405_v22  ;;  %v1358_v15 = vmul.f32 %v1342_v50, %v1342_v50  ;;  %v1847_v14 = vpop.eup %1846  ;;  %vm1453_vm11 = vcmp.gt.f32.partialorder %v2662_v21, 20.0  ;;  %v1303_v7 = vmin.f32 %v2734_v3, 20.0 }
 0x2b0   : > { %1860 = vrcp.f32 %v1411_v56  ;;  %v1359_v8 = vmul.f32 %v1343_v61, %v1343_v61  ;;  %v1349_v0 = vadd.f32 1.0, %v1847_v14  ;;  %v1703_v23 = vadd.f32 -1.0, %v1357_v46 }
 0x2b1   : > { %v1406_v32 = vadd.f32 1.0, %v1358_v15  ;;  %v903_v49 = vmul.f32 %v887_v19, %v2618_v26  ;;  %v1710_v39 = vadd.f32 -1.0, %v2707_v29  ;;  %vm1459_vm12 = vcmp.gt.f32.partialorder %v2622_v12, 20.0 }
 0x2b2   : > { %v1407_v34 = vadd.f32 1.0, %v1359_v8  ;;  %v1849_v48 = vpop.eup %1848  ;;  %v1365_v42 = vmul.f32 %v1349_v0, %v1349_v0  ;;  %v1332_v2 = vmul.f32 1.442695, %v1303_v7  ;;  %v1709_v47 = vadd.f32 -1.0, %v1363_v43 }
 0x2b3   : > { %1862 = vrcp.f32 %v1406_v32  ;;  %v1851_v33 = vpop.eup %1850  ;;  %v1344_v59 = vadd.f32 1.0, %v1849_v48  ;;  %v2951_v63 = vrot.slane %v2950_v27, %v2205_v57  ;;  %v1273_v38 = vrot.slane %v1268_v45, %v2205_v57  ;;  %v2952_v45 = vld [vmem:[#allocation8_spill] sm:$0xff] }
 0x2b4   : > { %1864 = vrcp.f32 %v1407_v34  ;;  %v1853_v25 = vpop.eup %1852  ;;  %v1413_v62 = vadd.f32 1.0, %v1365_v42  ;;  %v1388_v26 = vmul.f32 %v1702_v37, %v2657_v4  ;;  %v1414_v53 = vadd.f32 1.0, %v2739_v52 }
 0x2b5   : > { %v1145_v1 = vmul.f32 %v2951_v63, %v903_v49  ;;  %v1855_v40 = vpop.eup %1854  ;;  %v1360_v9 = vmul.f32 %v1344_v59, %v1344_v59  ;;  %v1345_v31 = vadd.f32 1.0, %v1853_v25  ;;  %1866 = vpow2.f32 %v1332_v2 }
 0x2b6   : > { %v1389_v51 = vmul.f32 %v1703_v23, %v2662_v21  ;;  %1868 = vrcp.f32 %v1413_v62  ;;  %v1704_v46 = vadd.f32 -1.0, %v1358_v15  ;;  %v1705_v18 = vadd.f32 -1.0, %v1359_v8 }
 0x2b7   : > { %v2753_v43 = vadd.f32 %v1273_v38, %v1145_v1  ;;  %v1408_v60 = vadd.f32 1.0, %v1360_v9  ;;  %v1361_v56 = vmul.f32 %v1345_v31, %v1345_v31  ;;  %v1395_v54 = vmul.f32 %v1709_v47, %v2622_v12 }
 0x2b8   : > { %v1857_v29 = vpop.eup %1856  ;;  %v1396_v50 = vmul.f32 %v1710_v39, %v2615_v20  ;;  %v1352_v58 = vadd.f32 1.0, %v1851_v33  ;;  %v1390_v28 = vmul.f32 %v1704_v46, %v2682_v41  ;;  %v1711_v37 = vadd.f32 -1.0, %v1365_v42 }
 0x2b9   : > { %v1859_v24 = vpop.eup %1858  ;;  %v1423_v6 = vmul.f32 %v1857_v29, %v1388_v26  ;;  %v1305_v44 = vmin.f32 %v2753_v43, 20.0  ;;  %1870 = vrcp.f32 %v1408_v60  ;;  %v1409_v14 = vadd.f32 1.0, %v1361_v56 }
 0x2ba   : > { %v1861_v57 = vpop.eup %1860  ;;  %v1425_v22 = vmul.f32 %v1859_v24, %v1389_v51  ;;  %v1439_v0 = vmul.f32 %v1855_v40, %v1396_v50  ;;  %v1391_v7 = vmul.f32 %v1705_v18, %v2684_v5  ;;  %vm1460_vm13 = vcmp.gt.f32.partialorder %v2615_v20, 20.0 }
 0x2bb   : > { %v1468_v61 = vsel %vm1452_vm10, %v2657_v4, %v1423_v6  ;;  %v1437_v32 = vmul.f32 %v1861_v57, %v1395_v54  ;;  %v1336_v8 = vmul.f32 1.442695, %v1305_v44  ;;  %v2770_v4 = vrot.slane %v1498_v36, %v2952_v45 }
 0x2bc   : > { %v1469_v15 = vsel %vm1453_vm11, %v2662_v21, %v1425_v22  ;;  %1872 = vrcp.f32 %v1409_v14  ;;  %v1706_v33 = vadd.f32 -1.0, %v1360_v9  ;;  %vm1454_vm14 = vcmp.gt.f32.partialorder %v2682_v41, 20.0 }
 0x2bd   : > { %v1499_v19 = vcombine.low %v1468_v61, %v1469_v15  ;;  %v1863_v34 = vpop.eup %1862  ;;  %v1475_v21 = vsel %vm1459_vm12, %v2622_v12, %v1437_v32  ;;  %1874 = vpow2.f32 %v1336_v8  ;;  %vm1455_vm15 = vcmp.gt.f32.partialorder %v2684_v5, 20.0 }
 0x2be   : > { %v1865_v48 = vpop.eup %1864  ;;  %v1427_v23 = vmul.f32 %v1863_v34, %v1390_v28  ;;  %v1547_v42 = vcombine.low %v2732_v30, %v1475_v21  ;;  %v1397_v36 = vmul.f32 %v1711_v37, %v2643_v17  ;;  %1876 = vrcp.f32 %v1414_v53 }
 0x2bf   : > { %v1515_v49 = vrot.slane %v1499_v19, %v2952_v45  ;;  %v1429_v39 = vmul.f32 %v1865_v48, %v1391_v7  ;;  %v1867_v16 = vpop.eup %1866  ;;  %v1368_v2 = vmul.f32 %v1352_v58, %v1352_v58  ;;  %v1476_v47 = vsel %vm1460_vm13, %v2615_v20, %v1439_v0 }
 0x2c0   : > { %v1470_v13 = vsel %vm1454_vm14, %v2682_v41, %v1427_v23  ;;  %v1869_v59 = vpop.eup %1868  ;;  %v1351_v25 = vadd.f32 1.0, %v1867_v16  ;;  %v1707_v27 = vadd.f32 -1.0, %v1361_v56  ;;  %v1392_v1 = vmul.f32 %v1706_v33, %v2702_v10 }
 0x2c1   : > { %v1530_v12 = vcombine.low %v2770_v4, %v1515_v49  ;;  %v1471_v30 = vsel %vm1455_vm15, %v2684_v5, %v1429_v39  ;;  %v1441_v63 = vmul.f32 %v1869_v59, %v1397_v36  ;;  %vm1461_vm0 = vcmp.gt.f32.partialorder %v2643_v17, 20.0 }
 0x2c2   : > { %v1500_v62 = vcombine.low %v1470_v13, %v1471_v30  ;;  %v1367_v41 = vmul.f32 %v1351_v25, %v1351_v25  ;;  %v1416_v9 = vadd.f32 1.0, %v1368_v2  ;;  %v1393_v5 = vmul.f32 %v1707_v27, %v2704_v11 }
 0x2c3   : > { %v1871_v38 = vpop.eup %1870  ;;  %v1477_v40 = vsel %vm1461_vm0, %v2643_v17, %v1441_v63  ;;  %vm1456_vm1 = vcmp.gt.f32.partialorder %v2702_v10, 20.0  ;;  %v1557_v20 = vrot.slane %v1547_v42, %v2952_v45  ;;  %v1712_v46 = vadd.f32 -1.0, %v2739_v52 }
 0x2c4   : > { %v1431_v26 = vmul.f32 %v1871_v38, %v1392_v1  ;;  %v1548_v31 = vcombine.low %v1476_v47, %v1477_v40  ;;  %v1415_v29 = vadd.f32 1.0, %v1367_v41  ;;  %vm1457_vm2 = vcmp.gt.f32.partialorder %v2704_v11, 20.0 }
 0x2c5   : > { %v1398_v44 = vmul.f32 %v1712_v46, %v2600_v35  ;;  %v1713_v50 = vadd.f32 -1.0, %v1367_v41  ;;  %v1522_v58 = vrot.slane %v1500_v62, %v2952_v45  ;;  %v1714_v14 = vadd.f32 -1.0, %v1368_v2 }
 0x2c6   : > { %v1873_v53 = vpop.eup %1872  ;;  %v1564_v51 = vrot.slane %v1548_v31, %v2952_v45  ;;  %1878 = vrcp.f32 %v1415_v29  ;;  %v1472_v60 = vsel %vm1456_vm1, %v2702_v10, %v1431_v26  ;;  %vm1462_vm3 = vcmp.gt.f32.partialorder %v2600_v35, 20.0 }
 0x2c7   : > { %v1875_v24 = vpop.eup %1874  ;;  %v1433_v17 = vmul.f32 %v1873_v53, %v1393_v5  ;;  %1880 = vrcp.f32 %v1416_v9  ;;  %v1399_v32 = vmul.f32 %v1713_v50, %v2734_v3  ;;  %vm1463_vm4 = vcmp.gt.f32.partialorder %v2734_v3, 20.0 }
 0x2c8   : > { %v1579_v6 = vcombine.low %v1557_v20, %v1564_v51  ;;  %v1353_v56 = vadd.f32 1.0, %v1875_v24  ;;  %v1877_v18 = vpop.eup %1876  ;;  %v1400_v7 = vmul.f32 %v1714_v14, %v2641_v55  ;;  %vm1598_vm5 = vcmask 130048  }
 0x2c9   : > { %v1473_v57 = vsel %vm1457_vm2, %v2704_v11, %v1433_v17  ;;  %v1443_v61 = vmul.f32 %v1877_v18, %v1398_v44  ;;  %v1538_v11 = vrot.slane %v1530_v12, %v2952_v45  ;;  %vm1464_vm6 = vcmp.gt.f32.partialorder %v2641_v55, 20.0 }
 0x2ca   : > { %v1501_v22 = vcombine.low %v1472_v60, %v1473_v57  ;;  %v1369_v54 = vmul.f32 %v1353_v56, %v1353_v56  ;;  %vm1465_vm7 = vcmp.gt.f32.partialorder %v2753_v43, 20.0  ;;  %v1587_v36 = vrot.slane %v1579_v6, %v2952_v45 }
 0x2cb   : > { %v1478_v28 = vsel %vm1462_vm3, %v2600_v35, %v1443_v61 }
 0x2cc   : > { %v1529_v52 = vrot.slane %v1501_v22, %v2952_v45  ;;  %v1417_v10 = vadd.f32 1.0, %v1369_v54  ;;  %v1715_v21 = vadd.f32 -1.0, %v1369_v54 }
 0x2ce   : > { %v1531_v15 = vcombine.low %v1522_v58, %v1529_v52  ;;  %1882 = vrcp.f32 %v1417_v10  ;;  %v1401_v49 = vmul.f32 %v1715_v21, %v2753_v43 }
 0x2d0   : > { %v1879_v8 = vpop.eup %1878  ;;  %v1545_v0 = vrot.slane %v1531_v15, %v2952_v45 }
 0x2d1   : > { %v1445_v19 = vmul.f32 %v1879_v8, %v1399_v32  ;;  %v1881_v37 = vpop.eup %1880 }
 0x2d2   : > { %v1546_v34 = vcombine.low %v1538_v11, %v1545_v0  ;;  %v1447_v23 = vmul.f32 %v1881_v37, %v1400_v7 }
 0x2d3   : > { %v1479_v4 = vsel %vm1463_vm4, %v2734_v3, %v1445_v19 }
 0x2d4   : > { %v1549_v48 = vcombine.low %v1478_v28, %v1479_v4  ;;  %1599 = vst.msk [vmem:[%s188_s28] sm:$0xff] %vm1598_vm5, %v1546_v34  ;;  %v1480_v42 = vsel %vm1464_vm6, %v2641_v55, %v1447_v23 }
 0x2d6   : > { %v1571_v16 = vrot.slane %v1549_v48, %v2952_v45 }
 0x2d8   : > { %v1883_v35 = vpop.eup %1882 }
 0x2d9   : > { %v1449_v33 = vmul.f32 %v1883_v35, %v1401_v49 }
 0x2db   : > { %v1481_v3 = vsel %vm1465_vm7, %v2753_v43, %v1449_v33 }
 0x2dc   : > { %v1550_v39 = vcombine.low %v1480_v42, %v1481_v3 }
 0x2de   : > { %v1578_v13 = vrot.slane %v1550_v39, %v2952_v45 }
 0x2e0   : > { %v1580_v12 = vcombine.low %v1571_v16, %v1578_v13 }
 0x2e2   : > { %v1594_v59 = vrot.slane %v1580_v12, %v2952_v45 }
 0x2e4   : > { %v1595_v55 = vcombine.low %v1587_v36, %v1594_v59 }
 0x2e6   : > { %1600 = vst.msk [vmem:[%s188_s28 + $0x8] sm:$0xff] %vm1598_vm5, %v1595_v55 }
 0x2e7   : > { %1927 = shalt.err (!%p1924_p2)
}
 0x2e8   : > { %s1928_s8 = scalar_lea.hbm %s2822_s11, 256  ;;  %s1932_s20 = scalar_lea.hbm %s2872_s3, 512 }
 0x2e9   : > { %p1929_p4 = scmp.ne.s32.totalorder %s2822_s11, %s1928_s8  ;;  %p1933_p9 = scmp.lt.u32.totalorder %s2822_s11, %s2872_s3 }
 0x2ea   : > { %p1934_p1 = scmp.lt.u32.totalorder %s1932_s20, %s1928_s8  ;;  %p1936_p6 = scmp.lt.u32.totalorder %s1928_s8, %s2822_s11 }
 0x2eb   : > { %p1930_p5 = pnand %p1929_p4, %p2953_p11 }
 0x2ec   : > { %p1935_p3 = por %p1934_p1, %p1933_p9 }
 0x2ed   : > { %p1931_p7 = pneg %p1930_p5 }
 0x2ee   : > { %p1937_p12 = por %p1936_p6, %p1935_p3 }
 0x2f0   : > { %p1938_p13 = pnand %p1937_p12, %p1931_p7 }
 0x2f2   : > { %1941 = shalt.err (!%p1938_p13)
}
 0x2f3   : > { %s1993_s27 = smov 128   ;;  %s1994_s28 = smov 8  }
 0x2f4   : > { %1742 = dma.vmem_to_hbm [thread:$0]  (%p2953_p11), %s2824_s30, 256, %s2822_s11, %s1602_s23, %s1993_s27, %s1993_s27, %s1994_s28  }
 0x2f5 PF: > { %s1630_s29 = sand.u32 1, %s1968_s12   ;;  %p2954_p8 = scmp.ne.s32.totalorder %s2893_s25, 0 }
 0x2f6   : > { %p2955_p10 = scmp.ge.s32.totalorder %s1980_s15, 2  ;;  %s1631_s9 = scalar_lea.sflag [#allocation4], %s1630_s29 }
 0x2f8   : > { %p1749_p0 = pnand %p2955_p10, %p2954_p8 }
 0x2fa   : > { %1963 = dma.done.wait (!%p1749_p0), %s1631_s9, 256  }
 0x2fb   : > { %1965 = vsyncadd (!%p1749_p0), %s1631_s9, 4294967040  ;;  %p16_p2 = scmp.ge.s32.totalorder %s2040_s18, 4   ;;  %s2956_s12 = smov %s1972_s13 }
 0x2fc   : > { %s2957_s13 = smov %s1976_s14  ;;  %s2958_s14 = smov %s2052_s21 }
 0x2fd   : > { %s2959_s15 = smov %s2040_s18  ;;  %18 = sbr.rel (!%p16_p2) target bundleno = 5 (0x5), region = 77 }
 0x304   :  { %1636 = vsyncpa [#allocation3], 1 }
 0x305   :  { %1638 = vsyncpa [#allocation3 + $0x1], 1 }
 0x306   :  { %1639 = vsyncpa [#allocation4], 1 }
 0x307   :  { %1641 = vsyncpa [#allocation4 + $0x1], 1 }

</bundles_post_ra>
